<compile_context>
chip_gen: v5e
topology: v5e:2x2
jax: 0.10.0
libtpu: 0.0.40
codegen_flags: <defaults>
</compile_context>

<pallas_src>
import jax
import jax.numpy as jnp
import numpy as np
from jax.experimental import pallas as pl
from jax.experimental.pallas import tpu as pltpu


# -----------------------------------------------------------------------------
# Kernel: grid = (batch, row-blocks).  Each step produces TH output rows.
# -----------------------------------------------------------------------------
def bottleneck_kernel(x_hbm,            # (N, H+2, W, Cp)    bf16  HBM (pl.ANY)
                      w1_ref,           # (Cp, Cwp)          bf16  (BN1 scale folded)
                      w2_ref,           # (9*Cwp, Cwp)       bf16  (BN2 scale folded)
                      w3_ref,           # (Cwp, Coutp)       bf16  (BN3 scale folded)
                      b1_ref,           # (1, Cwp)           f32
                      b2_ref,           # (1, Cwp)           f32
                      b3_ref,           # (1, Coutp)         f32
                      o_ref,            # (1, TH*W, Coutp)   bf16
                      x_vmem,           # (H+2, W, Cp)       bf16 scratch: whole image
                      pad_ref,          # (TH+2, W+2, Cwp)   f32  scratch: h1 + halo
                      col_ref,          # (TH, W, 9*Cwp)     bf16 scratch: im2col
                      dma_sem):         # (1,) DMA semaphore
    TH = pad_ref.shape[0] - 2
    W = pad_ref.shape[1] - 2
    Cp = x_vmem.shape[-1]
    Cwp = w1_ref.shape[1]

    n = pl.program_id(0)
    r = pl.program_id(1)
    rows_out = TH * W
    rows_halo = (TH + 2) * W

    # ---- fetch the whole bf16 image once per batch element (single buffer).
    # The r axis is "arbitrary" (sequential), so every r > 0 step of this n
    # reuses the resident copy; the exposed DMA cost is 1-in-R grid steps.
    @pl.when(r == 0)
    def _fetch_image():
        cp = pltpu.make_async_copy(x_hbm.at[n], x_vmem, dma_sem.at[0])
        cp.start()
        cp.wait()

    # ---- conv1 (1x1, BN1 scale pre-folded) + bias + relu over TH+2 rows -----
    xs = x_vmem[pl.ds(r * TH, TH + 2), :, :].reshape(rows_halo, Cp)
    h1 = jnp.dot(xs, w1_ref[...], preferred_element_type=jnp.float32)
    h1 = jnp.maximum(h1 + b1_ref[...], 0.0)

    # ---- stage h1 into the width-padded scratch (interior columns 1..W) -----
    pad_ref[:, pl.ds(1, W), :] = h1.reshape(TH + 2, W, Cwp)

    # Halo fix-ups.  NOTE: these must run AFTER the interior store above; the
    # r==0 / r==last halo rows of h1 come from the zero x rows and therefore
    # hold relu(b1) rather than the zeros conv2 padding requires.
    @pl.when(r == 0)
    def _init_columns_and_top():
        zc = jnp.zeros((TH + 2, 1, Cwp), jnp.float32)
        pad_ref[:, pl.ds(0, 1), :] = zc              # left conv2 zero column
        pad_ref[:, pl.ds(W + 1, 1), :] = zc          # right conv2 zero column
        pad_ref[0] = jnp.zeros((W + 2, Cwp), jnp.float32)   # top image border

    @pl.when(r == pl.num_programs(1) - 1)
    def _zero_bottom():                              # bottom image border
        pad_ref[TH + 1] = jnp.zeros((W + 2, Cwp), jnp.float32)

    # ---- im2col: 9 shifted taps into one (TH, W, 9*Cwp) bf16 slab -----------
    # TODO(synk): generate the dw = 1, 2 width shifts with pltpu.roll (XLU)
    # instead of sublane-misaligned static slices of the (W+2)-wide buffer.
    for k in range(9):
        dh, dw = divmod(k, 3)
        tap = pad_ref[pl.ds(dh, TH), pl.ds(dw, W), :]          # (TH, W, Cwp)
        col_ref[:, :, pl.ds(k * Cwp, Cwp)] = tap.astype(jnp.bfloat16)

    # ---- conv2 (3x3) as a single K=9*Cwp MXU matmul + bias + relu -----------
    h2 = jnp.dot(col_ref[...].reshape(rows_out, 9 * Cwp), w2_ref[...],
                 preferred_element_type=jnp.float32)
    h2 = jnp.maximum(h2 + b2_ref[...], 0.0)

    # ---- conv3 (1x1) + bn3 bias ----------------------------------------------
    h3 = jnp.dot(h2.astype(jnp.bfloat16), w3_ref[...],
                 preferred_element_type=jnp.float32)
    h3 = h3 + b3_ref[...]

    # ---- residual add in f32 (identity upcast from bf16) + relu3 ------------
    ident = x_vmem[pl.ds(r * TH + 1, TH), :, :].reshape(rows_out, Cp)
    out = jnp.maximum(h3 + ident.astype(jnp.float32), 0.0)
    o_ref[0] = out.astype(o_ref.dtype)


# -----------------------------------------------------------------------------
# Wrapper: BN folding into weights, 128-lane channel padding, row tiling.
# -----------------------------------------------------------------------------
def _fold_bn(gamma, beta, mean, var, eps=1e-5):
    scale = gamma / jnp.sqrt(var + eps)
    return scale, beta - mean * scale


def _round_up(x, m):
    return ((x + m - 1) // m) * m


def _row_tile(H, W, n_batch, target_rows=2048):
    """Largest divisor TH of H with TH*W <= target_rows.  TH == H (R = 1) is
    only allowed when the batch axis alone provides pipeline / megacore work
    (N >= 4) or the image is tiny."""
    best = 1
    for th in range(1, H + 1):
        if H % th or th * W > target_rows:
            continue
        if th == H and H > 8 and n_batch < 4:
            continue
        best = th
    return best


@jax.jit
def bottleneck_forward(x, params):
    """x: (N, H, W, Cin) f32 NHWC.  Returns (N, H, W, Cout) bf16."""
    N, H, W, Cin = x.shape
    w1, w2, w3 = params["w1"], params["w2"], params["w3"]
    Cw, Cout = w1.shape[1], w3.shape[1]
    # TODO(synk): stride>1 / downsample branch of the module is not implemented.
    assert Cin == Cout, "stride=1 / downsample=None requires inplanes == planes*4"
    assert w2.shape == (9, Cw, Cw)
    # TODO(synk): pad W up to a multiple of 8 for general spatial sizes.
    assert W % 8 == 0, "W sits on the sublane axis; W % 8 must be 0"

    Cp = _round_up(Cin, 128)
    Cwp = _round_up(Cw, 128)
    Coutp = _round_up(Cout, 128)     # == Cp because Cin == Cout
    # TODO(synk): for Cw < 128, pack the im2col K axis as round_up(9*Cw, 128)
    # instead of padding each tap to 128 lanes (cuts conv2 MXU work up to 4x).

    TH = _row_tile(H, W, N)
    R = H // TH
    bf16 = jnp.bfloat16

    # ---- fold (inference) BN scales into the bf16 weights; keep f32 biases --
    s1, b1 = _fold_bn(*params["bn1"])
    s2, b2 = _fold_bn(*params["bn2"])
    s3, b3 = _fold_bn(*params["bn3"])

    w1p = jnp.pad(w1 * s1[None, :], ((0, Cp - Cin), (0, Cwp - Cw))).astype(bf16)
    w2p = jnp.pad(w2 * s2[None, None, :],
                  ((0, 0), (0, Cwp - Cw), (0, Cwp - Cw))
                  ).astype(bf16).reshape(9 * Cwp, Cwp)
    w3p = jnp.pad(w3 * s3[None, :],
                  ((0, Cwp - Cw), (0, Coutp - Cout))).astype(bf16)

    b1p = jnp.pad(b1, (0, Cwp - Cw)).reshape(1, Cwp)
    b2p = jnp.pad(b2, (0, Cwp - Cw)).reshape(1, Cwp)
    b3p = jnp.pad(b3, (0, Coutp - Cout)).reshape(1, Coutp)

    # ---- bf16 HBM activations: channel pad + one zero row above/below -------
    xp = jnp.pad(x, ((0, 0), (1, 1), (0, 0), (0, Cp - Cin))).astype(bf16)

    # ---- VMEM budget derived from the actual block / scratch sizes ----------
    vmem_needed = (
        (H + 2) * W * Cp * 2                                  # image scratch (1 buf)
        + (TH + 2) * (W + 2) * Cwp * 4                        # pad_ref (f32)
        + TH * W * 9 * Cwp * 2                                # col_ref (bf16)
        + 2 * TH * W * Coutp * 2                              # output block (2 bufs)
        + 2 * 2 * (Cp * Cwp + 9 * Cwp * Cwp + Cwp * Coutp)    # bf16 weights (2 bufs)
        + 2 * 4 * (2 * Cwp + Coutp)                           # f32 biases (2 bufs)
    )
    try:
        vmem_cap = pltpu.get_tpu_info().vmem_capacity_bytes
    except Exception:                       # older runtimes / query unavailable
        vmem_cap = 64 * 1024 * 1024         # v7x-safe fallback
    vmem_limit = min(max(vmem_needed + (8 << 20), 32 << 20), int(vmem_cap * 0.9))

    grid_spec = pltpu.PrefetchScalarGridSpec(
        num_scalar_prefetch=0,
        grid=(N, R),
        in_specs=[
            # Whole image stays in HBM; the kernel DMAs it into a single VMEM
            # scratch once per batch element (no double buffering of the
            # dominant block).
            pl.BlockSpec(memory_space=pl.ANY),
            pl.BlockSpec((Cp, Cwp), lambda n, r: (0, 0)),        # w1 * s1
            pl.BlockSpec((9 * Cwp, Cwp), lambda n, r: (0, 0)),   # w2 * s2 (im2col)
            pl.BlockSpec((Cwp, Coutp), lambda n, r: (0, 0)),     # w3 * s3
            pl.BlockSpec((1, Cwp), lambda n, r: (0, 0)),         # b1
            pl.BlockSpec((1, Cwp), lambda n, r: (0, 0)),         # b2
            pl.BlockSpec((1, Coutp), lambda n, r: (0, 0)),       # b3
        ],
        # Lane-dense 2-D (rows, C) bf16 output slabs; spatial reshape in wrapper.
        out_specs=pl.BlockSpec((1, TH * W, Coutp), lambda n, r: (n, r, 0)),
        scratch_shapes=[
            pltpu.VMEM((H + 2, W, Cp), bf16),                # whole-image buffer
            pltpu.VMEM((TH + 2, W + 2, Cwp), jnp.float32),   # h1 + zero halo
            pltpu.VMEM((TH, W, 9 * Cwp), bf16),              # im2col slab
            pltpu.SemaphoreType.DMA((1,)),
        ],
    )

    flops = 2 * N * H * W * (Cp * Cwp + 9 * Cwp * Cwp + Cwp * Coutp)
    bytes_accessed = (xp.size * 2 + N * H * W * Coutp * 2
                      + (w1p.size + w2p.size + w3p.size) * 2)

    out_flat = pl.pallas_call(
        bottleneck_kernel,
        out_shape=jax.ShapeDtypeStruct((N, H * W, Coutp), bf16),
        grid_spec=grid_spec,
        compiler_params=pltpu.CompilerParams(
            # Batch axis parallel (megacore shards whole images -> each image
            # is fetched once per chip); row-block axis sequential.
            dimension_semantics=("parallel", "arbitrary"),
            vmem_limit_bytes=vmem_limit),
        cost_estimate=pl.CostEstimate(flops=flops, transcendentals=0,
                                      bytes_accessed=bytes_accessed),
    )(xp, w1p, w2p, w3p, b1p, b2p, b3p)

    out = out_flat.reshape(N, H, W, Coutp)
    if Coutp != Cout:
        out = out[..., :Cout]
    return out


# -----------------------------------------------------------------------------
# Pure-JAX f32 reference (lax.conv) for correctness check.
# -----------------------------------------------------------------------------
def reference_forward(x, params):
    def bn(y, p, eps=1e-5):
        gamma, beta, mean, var = p
        return (y - mean) / jnp.sqrt(var + eps) * gamma + beta

    dn = ("NHWC", "HWIO", "NHWC")
    Cin = x.shape[-1]
    Cw = params["w1"].shape[1]
    Cout = params["w3"].shape[1]

    w1 = params["w1"].reshape(1, 1, Cin, Cw)
    w2 = params["w2"].reshape(3, 3, Cw, Cw)
    w3 = params["w3"].reshape(1, 1, Cw, Cout)

    h = jax.lax.conv_general_dilated(x, w1, (1, 1), "VALID", dimension_numbers=dn)
    h = jnp.maximum(bn(h, params["bn1"]), 0.0)
    h = jax.lax.conv_general_dilated(h, w2, (1, 1), ((1, 1), (1, 1)),
                                     dimension_numbers=dn)
    h = jnp.maximum(bn(h, params["bn2"]), 0.0)
    h = jax.lax.conv_general_dilated(h, w3, (1, 1), "VALID", dimension_numbers=dn)
    h = bn(h, params["bn3"])
    return jnp.maximum(h + x, 0.0)


# -----------------------------------------------------------------------------
# Deterministic synthetic parameters (shapes follow Bottleneck.__init__).
# -----------------------------------------------------------------------------
def make_params(key, inplanes, planes, base_width=64, groups=1, expansion=4):
    width = int(planes * (base_width / 64.0)) * groups
    cout = planes * expansion
    ks = jax.random.split(key, 6)

    def bn_params(k, c):
        k1, k2, k3, k4 = jax.random.split(k, 4)
        gamma = jax.random.uniform(k1, (c,), jnp.float32, 0.5, 1.5)
        beta = jax.random.normal(k2, (c,), jnp.float32) * 0.1
        mean = jax.random.normal(k3, (c,), jnp.float32) * 0.1
        var = jax.random.uniform(k4, (c,), jnp.float32, 0.5, 1.5)
        return (gamma, beta, mean, var)

    return {
        "w1": jax.random.normal(ks[0], (inplanes, width), jnp.float32) * 0.2,
        "w2": jax.random.normal(ks[1], (9, width, width), jnp.float32) * 0.2,
        "w3": jax.random.normal(ks[2], (width, cout), jnp.float32) * 0.2,
        "bn1": bn_params(ks[3], width),
        "bn2": bn_params(ks[4], width),
        "bn3": bn_params(ks[5], cout),
    }


if __name__ == "__main__":
    key = jax.random.PRNGKey(0)
    kx, kp = jax.random.split(key)

    # stride=1, downsample=None  =>  inplanes == planes * expansion
    N, H, W = 2, 16, 16
    planes = 4
    inplanes = planes * 4            # 16

    x = jax.random.normal(kx, (N, H, W, inplanes), jnp.float32)
    params = make_params(kp, inplanes, planes)

    out = jax.block_until_ready(bottleneck_forward(x, params))
    ref = jax.block_until_ready(reference_forward(x, params))

    # bf16 activations end-to-end (f32 MXU accumulation, f32 residual add)
    # compared against a pure-f32 reference -> relaxed tolerance.
    np.testing.assert_allclose(np.asarray(out.astype(jnp.float32)),
                               np.asarray(ref), rtol=5e-2, atol=8e-2)
    print("KERNEL_OK")
</pallas_src>

<mosaic_0001>
module attributes {stable_mosaic.version = 11 : i64} {
  func.func @bottleneck_kernel(%arg0: i32, %arg1: i32, %arg2: memref<2x18x16x128xbf16, #tpu.memory_space<any>>, %arg3: memref<128x128xbf16, #tpu.memory_space<vmem>>, %arg4: memref<1152x128xbf16, #tpu.memory_space<vmem>>, %arg5: memref<128x128xbf16, #tpu.memory_space<vmem>>, %arg6: memref<1x128xf32, #tpu.memory_space<vmem>>, %arg7: memref<1x128xf32, #tpu.memory_space<vmem>>, %arg8: memref<1x128xf32, #tpu.memory_space<vmem>>, %arg9: memref<1x128x128xbf16, #tpu.memory_space<vmem>>, %arg10: memref<18x16x128xbf16, #tpu.memory_space<vmem>>, %arg11: memref<10x18x128xf32, #tpu.memory_space<vmem>>, %arg12: memref<8x16x1152xbf16, #tpu.memory_space<vmem>>, %arg13: memref<1x!tpu.dma_semaphore, #tpu.memory_space<semaphore_mem>>) attributes {dimension_semantics = [#tpu.dimension_semantics<parallel>, #tpu.dimension_semantics<arbitrary>], iteration_bounds = array<i64: 2, 2>, scalar_prefetch = 0 : i64, scratch_operands = 4 : i64, tpu.core_type = #tpu.core_type<tc>, window_params = [{}, {pipeline_mode = #tpu.pipeline_mode<synchronous>, transform_indices = @transform_1, window_bounds = array<i64: 128, 128>}, {pipeline_mode = #tpu.pipeline_mode<synchronous>, transform_indices = @transform_2, window_bounds = array<i64: 1152, 128>}, {pipeline_mode = #tpu.pipeline_mode<synchronous>, transform_indices = @transform_3, window_bounds = array<i64: 128, 128>}, {pipeline_mode = #tpu.pipeline_mode<synchronous>, transform_indices = @transform_4, window_bounds = array<i64: 1, 128>}, {pipeline_mode = #tpu.pipeline_mode<synchronous>, transform_indices = @transform_5, window_bounds = array<i64: 1, 128>}, {pipeline_mode = #tpu.pipeline_mode<synchronous>, transform_indices = @transform_6, window_bounds = array<i64: 1, 128>}, {transform_indices = @transform_7, window_bounds = array<i64: 1, 128, 128>}]} {
    %c0_i32 = arith.constant 0 : i32
    %0 = arith.cmpi eq, %arg1, %c0_i32 : i32
    %1 = arith.extui %0 : i1 to i32
    %c0_i32_0 = arith.constant 0 : i32
    %2 = arith.cmpi ne, %1, %c0_i32_0 : i32
    scf.if %2 {
      %c0_i32_79 = arith.constant 0 : i32
      %c0_i32_80 = arith.constant 0 : i32
      %c0_i32_81 = arith.constant 0 : i32
      %c0_i32_82 = arith.constant 0 : i32
      %77 = tpu.memref_slice %arg2[%arg0, %c0_i32_80, %c0_i32_81, %c0_i32_82] : memref<2x18x16x128xbf16, #tpu.memory_space<any>> -> memref<1x18x16x128xbf16, #tpu.memory_space<any>>
      %78 = tpu.memref_squeeze %77 : memref<1x18x16x128xbf16, #tpu.memory_space<any>> -> memref<18x16x128xbf16, #tpu.memory_space<any>>
      %79 = tpu.memref_slice %arg13[%c0_i32_79] : memref<1x!tpu.dma_semaphore, #tpu.memory_space<semaphore_mem>> -> memref<1x!tpu.dma_semaphore, #tpu.memory_space<semaphore_mem>>
      %80 = tpu.memref_squeeze %79 : memref<1x!tpu.dma_semaphore, #tpu.memory_space<semaphore_mem>> -> memref<!tpu.dma_semaphore, #tpu.memory_space<semaphore_mem>>
      tpu.enqueue_dma source(%78 : memref<18x16x128xbf16, #tpu.memory_space<any>>) target(%arg10 : memref<18x16x128xbf16, #tpu.memory_space<vmem>>) target_semaphore(%80 : memref<!tpu.dma_semaphore, #tpu.memory_space<semaphore_mem>>)
      %c0_i32_83 = arith.constant 0 : i32
      %c0_i32_84 = arith.constant 0 : i32
      %c0_i32_85 = arith.constant 0 : i32
      %c0_i32_86 = arith.constant 0 : i32
      %81 = tpu.memref_slice %arg2[%arg0, %c0_i32_84, %c0_i32_85, %c0_i32_86] : memref<2x18x16x128xbf16, #tpu.memory_space<any>> -> memref<1x18x16x128xbf16, #tpu.memory_space<any>>
      %82 = tpu.memref_squeeze %81 : memref<1x18x16x128xbf16, #tpu.memory_space<any>> -> memref<18x16x128xbf16, #tpu.memory_space<any>>
      %83 = tpu.memref_slice %arg13[%c0_i32_83] : memref<1x!tpu.dma_semaphore, #tpu.memory_space<semaphore_mem>> -> memref<1x!tpu.dma_semaphore, #tpu.memory_space<semaphore_mem>>
      %84 = tpu.memref_squeeze %83 : memref<1x!tpu.dma_semaphore, #tpu.memory_space<semaphore_mem>> -> memref<!tpu.dma_semaphore, #tpu.memory_space<semaphore_mem>>
      tpu.wait_dma2 semaphore(%84 : memref<!tpu.dma_semaphore, #tpu.memory_space<semaphore_mem>>) src(%82 : memref<18x16x128xbf16, #tpu.memory_space<any>>) dst(%arg10 : memref<18x16x128xbf16, #tpu.memory_space<vmem>>)
    } else {
    }
    %c8_i32 = arith.constant 8 : i32
    %3 = arith.muli %arg1, %c8_i32 : i32
    %4 = arith.index_cast %3 : i32 to index
    %c0 = arith.constant 0 : index
    %c0_1 = arith.constant 0 : index
    %5 = vector.load %arg10[%4, %c0, %c0_1] : memref<18x16x128xbf16, #tpu.memory_space<vmem>>, vector<10x16x128xbf16>
    %6 = vector.shape_cast %5 : vector<10x16x128xbf16> to vector<160x128xbf16>
    %c0_2 = arith.constant 0 : index
    %c0_3 = arith.constant 0 : index
    %7 = vector.load %arg3[%c0_2, %c0_3] : memref<128x128xbf16, #tpu.memory_space<vmem>>, vector<128x128xbf16>
    %cst = arith.constant dense<0.000000e+00> : vector<160x128xf32>
    %8 = tpu.matmul %6, %7, %cst {dimension_numbers = #tpu.dot_dimension_numbers<[1], [0], [0], [1], [0, 0, 1, 1], [], []>} : vector<160x128xbf16>, vector<128x128xbf16>, vector<160x128xf32> -> vector<160x128xf32>
    %c0_4 = arith.constant 0 : index
    %c0_5 = arith.constant 0 : index
    %9 = vector.load %arg6[%c0_4, %c0_5] : memref<1x128xf32, #tpu.memory_space<vmem>>, vector<1x128xf32>
    %10 = vector.broadcast %9 : vector<1x128xf32> to vector<160x128xf32>
    %11 = arith.addf %8, %10 : vector<160x128xf32>
    %cst_6 = arith.constant 0.000000e+00 : f32
    %12 = vector.broadcast %cst_6 : f32 to vector<160x128xf32>
    %13 = arith.maximumf %11, %12 : vector<160x128xf32>
    %14 = vector.shape_cast %13 : vector<160x128xf32> to vector<10x16x128xf32>
    %c0_7 = arith.constant 0 : index
    %c1 = arith.constant 1 : index
    %c0_8 = arith.constant 0 : index
    %15 = vector.load %arg11[%c0_7, %c1, %c0_8] : memref<10x18x128xf32, #tpu.memory_space<vmem>>, vector<10x16x128xf32>
    tpu.vector_store %arg11[%c0_7, %c1, %c0_8], %14 {strides = array<i32>} : memref<10x18x128xf32, #tpu.memory_space<vmem>>, vector<10x16x128xf32>,
    %c0_i32_9 = arith.constant 0 : i32
    %16 = arith.cmpi eq, %arg1, %c0_i32_9 : i32
    %17 = arith.extui %16 : i1 to i32
    %c0_i32_10 = arith.constant 0 : i32
    %18 = arith.cmpi ne, %17, %c0_i32_10 : i32
    scf.if %18 {
      %cst_79 = arith.constant 0.000000e+00 : f32
      %77 = vector.broadcast %cst_79 : f32 to vector<10x1x128xf32>
      %c0_80 = arith.constant 0 : index
      %c0_81 = arith.constant 0 : index
      %c0_82 = arith.constant 0 : index
      %78 = vector.load %arg11[%c0_80, %c0_81, %c0_82] : memref<10x18x128xf32, #tpu.memory_space<vmem>>, vector<10x1x128xf32>
      tpu.vector_store %arg11[%c0_80, %c0_81, %c0_82], %77 {strides = array<i32>} : memref<10x18x128xf32, #tpu.memory_space<vmem>>, vector<10x1x128xf32>,
      %c0_83 = arith.constant 0 : index
      %c17 = arith.constant 17 : index
      %c0_84 = arith.constant 0 : index
      %79 = vector.load %arg11[%c0_83, %c17, %c0_84] : memref<10x18x128xf32, #tpu.memory_space<vmem>>, vector<10x1x128xf32>
      tpu.vector_store %arg11[%c0_83, %c17, %c0_84], %77 {strides = array<i32>} : memref<10x18x128xf32, #tpu.memory_space<vmem>>, vector<10x1x128xf32>,
      %cst_85 = arith.constant 0.000000e+00 : f32
      %80 = vector.broadcast %cst_85 : f32 to vector<18x128xf32>
      %c0_86 = arith.constant 0 : index
      %c0_87 = arith.constant 0 : index
      %c0_88 = arith.constant 0 : index
      %81 = vector.load %arg11[%c0_86, %c0_87, %c0_88] : memref<10x18x128xf32, #tpu.memory_space<vmem>>, vector<1x18x128xf32>
      %82 = vector.shape_cast %81 : vector<1x18x128xf32> to vector<18x128xf32>
      %83 = vector.shape_cast %80 : vector<18x128xf32> to vector<1x18x128xf32>
      tpu.vector_store %arg11[%c0_86, %c0_87, %c0_88], %83 {strides = array<i32>} : memref<10x18x128xf32, #tpu.memory_space<vmem>>, vector<1x18x128xf32>,
    } else {
    }
    %c1_i32 = arith.constant 1 : i32
    %19 = arith.cmpi eq, %arg1, %c1_i32 : i32
    %20 = arith.extui %19 : i1 to i32
    %c0_i32_11 = arith.constant 0 : i32
    %21 = arith.cmpi ne, %20, %c0_i32_11 : i32
    scf.if %21 {
      %cst_79 = arith.constant 0.000000e+00 : f32
      %77 = vector.broadcast %cst_79 : f32 to vector<18x128xf32>
      %c9 = arith.constant 9 : index
      %c0_80 = arith.constant 0 : index
      %c0_81 = arith.constant 0 : index
      %78 = vector.load %arg11[%c9, %c0_80, %c0_81] : memref<10x18x128xf32, #tpu.memory_space<vmem>>, vector<1x18x128xf32>
      %79 = vector.shape_cast %78 : vector<1x18x128xf32> to vector<18x128xf32>
      %80 = vector.shape_cast %77 : vector<18x128xf32> to vector<1x18x128xf32>
      tpu.vector_store %arg11[%c9, %c0_80, %c0_81], %80 {strides = array<i32>} : memref<10x18x128xf32, #tpu.memory_space<vmem>>, vector<1x18x128xf32>,
    } else {
    }
    %c0_12 = arith.constant 0 : index
    %c0_13 = arith.constant 0 : index
    %c0_14 = arith.constant 0 : index
    %22 = vector.load %arg11[%c0_12, %c0_13, %c0_14] : memref<10x18x128xf32, #tpu.memory_space<vmem>>, vector<8x16x128xf32>
    %23 = arith.truncf %22 : vector<8x16x128xf32> to vector<8x16x128xbf16>
    %c0_15 = arith.constant 0 : index
    %c0_16 = arith.constant 0 : index
    %c0_17 = arith.constant 0 : index
    %24 = vector.load %arg12[%c0_15, %c0_16, %c0_17] : memref<8x16x1152xbf16, #tpu.memory_space<vmem>>, vector<8x16x128xbf16>
    tpu.vector_store %arg12[%c0_15, %c0_16, %c0_17], %23 {strides = array<i32>} : memref<8x16x1152xbf16, #tpu.memory_space<vmem>>, vector<8x16x128xbf16>,
    %c0_18 = arith.constant 0 : index
    %c1_19 = arith.constant 1 : index
    %c0_20 = arith.constant 0 : index
    %25 = vector.load %arg11[%c0_18, %c1_19, %c0_20] : memref<10x18x128xf32, #tpu.memory_space<vmem>>, vector<8x16x128xf32>
    %26 = arith.truncf %25 : vector<8x16x128xf32> to vector<8x16x128xbf16>
    %c0_21 = arith.constant 0 : index
    %c0_22 = arith.constant 0 : index
    %c128 = arith.constant 128 : index
    %27 = vector.load %arg12[%c0_21, %c0_22, %c128] : memref<8x16x1152xbf16, #tpu.memory_space<vmem>>, vector<8x16x128xbf16>
    tpu.vector_store %arg12[%c0_21, %c0_22, %c128], %26 {strides = array<i32>} : memref<8x16x1152xbf16, #tpu.memory_space<vmem>>, vector<8x16x128xbf16>,
    %c0_23 = arith.constant 0 : index
    %c2 = arith.constant 2 : index
    %c0_24 = arith.constant 0 : index
    %28 = vector.load %arg11[%c0_23, %c2, %c0_24] : memref<10x18x128xf32, #tpu.memory_space<vmem>>, vector<8x16x128xf32>
    %29 = arith.truncf %28 : vector<8x16x128xf32> to vector<8x16x128xbf16>
    %c0_25 = arith.constant 0 : index
    %c0_26 = arith.constant 0 : index
    %c256 = arith.constant 256 : index
    %30 = vector.load %arg12[%c0_25, %c0_26, %c256] : memref<8x16x1152xbf16, #tpu.memory_space<vmem>>, vector<8x16x128xbf16>
    tpu.vector_store %arg12[%c0_25, %c0_26, %c256], %29 {strides = array<i32>} : memref<8x16x1152xbf16, #tpu.memory_space<vmem>>, vector<8x16x128xbf16>,
    %c1_27 = arith.constant 1 : index
    %c0_28 = arith.constant 0 : index
    %c0_29 = arith.constant 0 : index
    %31 = vector.load %arg11[%c1_27, %c0_28, %c0_29] : memref<10x18x128xf32, #tpu.memory_space<vmem>>, vector<8x16x128xf32>
    %32 = arith.truncf %31 : vector<8x16x128xf32> to vector<8x16x128xbf16>
    %c0_30 = arith.constant 0 : index
    %c0_31 = arith.constant 0 : index
    %c384 = arith.constant 384 : index
    %33 = vector.load %arg12[%c0_30, %c0_31, %c384] : memref<8x16x1152xbf16, #tpu.memory_space<vmem>>, vector<8x16x128xbf16>
    tpu.vector_store %arg12[%c0_30, %c0_31, %c384], %32 {strides = array<i32>} : memref<8x16x1152xbf16, #tpu.memory_space<vmem>>, vector<8x16x128xbf16>,
    %c1_32 = arith.constant 1 : index
    %c1_33 = arith.constant 1 : index
    %c0_34 = arith.constant 0 : index
    %34 = vector.load %arg11[%c1_32, %c1_33, %c0_34] : memref<10x18x128xf32, #tpu.memory_space<vmem>>, vector<8x16x128xf32>
    %35 = arith.truncf %34 : vector<8x16x128xf32> to vector<8x16x128xbf16>
    %c0_35 = arith.constant 0 : index
    %c0_36 = arith.constant 0 : index
    %c512 = arith.constant 512 : index
    %36 = vector.load %arg12[%c0_35, %c0_36, %c512] : memref<8x16x1152xbf16, #tpu.memory_space<vmem>>, vector<8x16x128xbf16>
    tpu.vector_store %arg12[%c0_35, %c0_36, %c512], %35 {strides = array<i32>} : memref<8x16x1152xbf16, #tpu.memory_space<vmem>>, vector<8x16x128xbf16>,
    %c1_37 = arith.constant 1 : index
    %c2_38 = arith.constant 2 : index
    %c0_39 = arith.constant 0 : index
    %37 = vector.load %arg11[%c1_37, %c2_38, %c0_39] : memref<10x18x128xf32, #tpu.memory_space<vmem>>, vector<8x16x128xf32>
    %38 = arith.truncf %37 : vector<8x16x128xf32> to vector<8x16x128xbf16>
    %c0_40 = arith.constant 0 : index
    %c0_41 = arith.constant 0 : index
    %c640 = arith.constant 640 : index
    %39 = vector.load %arg12[%c0_40, %c0_41, %c640] : memref<8x16x1152xbf16, #tpu.memory_space<vmem>>, vector<8x16x128xbf16>
    tpu.vector_store %arg12[%c0_40, %c0_41, %c640], %38 {strides = array<i32>} : memref<8x16x1152xbf16, #tpu.memory_space<vmem>>, vector<8x16x128xbf16>,
    %c2_42 = arith.constant 2 : index
    %c0_43 = arith.constant 0 : index
    %c0_44 = arith.constant 0 : index
    %40 = vector.load %arg11[%c2_42, %c0_43, %c0_44] : memref<10x18x128xf32, #tpu.memory_space<vmem>>, vector<8x16x128xf32>
    %41 = arith.truncf %40 : vector<8x16x128xf32> to vector<8x16x128xbf16>
    %c0_45 = arith.constant 0 : index
    %c0_46 = arith.constant 0 : index
    %c768 = arith.constant 768 : index
    %42 = vector.load %arg12[%c0_45, %c0_46, %c768] : memref<8x16x1152xbf16, #tpu.memory_space<vmem>>, vector<8x16x128xbf16>
    tpu.vector_store %arg12[%c0_45, %c0_46, %c768], %41 {strides = array<i32>} : memref<8x16x1152xbf16, #tpu.memory_space<vmem>>, vector<8x16x128xbf16>,
    %c2_47 = arith.constant 2 : index
    %c1_48 = arith.constant 1 : index
    %c0_49 = arith.constant 0 : index
    %43 = vector.load %arg11[%c2_47, %c1_48, %c0_49] : memref<10x18x128xf32, #tpu.memory_space<vmem>>, vector<8x16x128xf32>
    %44 = arith.truncf %43 : vector<8x16x128xf32> to vector<8x16x128xbf16>
    %c0_50 = arith.constant 0 : index
    %c0_51 = arith.constant 0 : index
    %c896 = arith.constant 896 : index
    %45 = vector.load %arg12[%c0_50, %c0_51, %c896] : memref<8x16x1152xbf16, #tpu.memory_space<vmem>>, vector<8x16x128xbf16>
    tpu.vector_store %arg12[%c0_50, %c0_51, %c896], %44 {strides = array<i32>} : memref<8x16x1152xbf16, #tpu.memory_space<vmem>>, vector<8x16x128xbf16>,
    %c2_52 = arith.constant 2 : index
    %c2_53 = arith.constant 2 : index
    %c0_54 = arith.constant 0 : index
    %46 = vector.load %arg11[%c2_52, %c2_53, %c0_54] : memref<10x18x128xf32, #tpu.memory_space<vmem>>, vector<8x16x128xf32>
    %47 = arith.truncf %46 : vector<8x16x128xf32> to vector<8x16x128xbf16>
    %c0_55 = arith.constant 0 : index
    %c0_56 = arith.constant 0 : index
    %c1024 = arith.constant 1024 : index
    %48 = vector.load %arg12[%c0_55, %c0_56, %c1024] : memref<8x16x1152xbf16, #tpu.memory_space<vmem>>, vector<8x16x128xbf16>
    tpu.vector_store %arg12[%c0_55, %c0_56, %c1024], %47 {strides = array<i32>} : memref<8x16x1152xbf16, #tpu.memory_space<vmem>>, vector<8x16x128xbf16>,
    %c0_57 = arith.constant 0 : index
    %c0_58 = arith.constant 0 : index
    %c0_59 = arith.constant 0 : index
    %49 = vector.load %arg12[%c0_57, %c0_58, %c0_59] : memref<8x16x1152xbf16, #tpu.memory_space<vmem>>, vector<8x16x1152xbf16>
    %50 = vector.shape_cast %49 : vector<8x16x1152xbf16> to vector<128x1152xbf16>
    %c0_60 = arith.constant 0 : index
    %c0_61 = arith.constant 0 : index
    %51 = vector.load %arg4[%c0_60, %c0_61] : memref<1152x128xbf16, #tpu.memory_space<vmem>>, vector<1152x128xbf16>
    %cst_62 = arith.constant dense<0.000000e+00> : vector<128x128xf32>
    %52 = tpu.matmul %50, %51, %cst_62 {dimension_numbers = #tpu.dot_dimension_numbers<[1], [0], [0], [1], [0, 0, 1, 1], [], []>} : vector<128x1152xbf16>, vector<1152x128xbf16>, vector<128x128xf32> -> vector<128x128xf32>
    %c0_63 = arith.constant 0 : index
    %c0_64 = arith.constant 0 : index
    %53 = vector.load %arg7[%c0_63, %c0_64] : memref<1x128xf32, #tpu.memory_space<vmem>>, vector<1x128xf32>
    %54 = vector.broadcast %53 : vector<1x128xf32> to vector<128x128xf32>
    %55 = arith.addf %52, %54 : vector<128x128xf32>
    %cst_65 = arith.constant 0.000000e+00 : f32
    %56 = vector.broadcast %cst_65 : f32 to vector<128x128xf32>
    %57 = arith.maximumf %55, %56 : vector<128x128xf32>
    %58 = arith.truncf %57 : vector<128x128xf32> to vector<128x128xbf16>
    %c0_66 = arith.constant 0 : index
    %c0_67 = arith.constant 0 : index
    %59 = vector.load %arg5[%c0_66, %c0_67] : memref<128x128xbf16, #tpu.memory_space<vmem>>, vector<128x128xbf16>
    %cst_68 = arith.constant dense<0.000000e+00> : vector<128x128xf32>
    %60 = tpu.matmul %58, %59, %cst_68 {dimension_numbers = #tpu.dot_dimension_numbers<[1], [0], [0], [1], [0, 0, 1, 1], [], []>} : vector<128x128xbf16>, vector<128x128xbf16>, vector<128x128xf32> -> vector<128x128xf32>
    %c0_69 = arith.constant 0 : index
    %c0_70 = arith.constant 0 : index
    %61 = vector.load %arg8[%c0_69, %c0_70] : memref<1x128xf32, #tpu.memory_space<vmem>>, vector<1x128xf32>
    %62 = vector.broadcast %61 : vector<1x128xf32> to vector<128x128xf32>
    %63 = arith.addf %60, %62 : vector<128x128xf32>
    %c8_i32_71 = arith.constant 8 : i32
    %64 = arith.muli %arg1, %c8_i32_71 : i32
    %c1_i32_72 = arith.constant 1 : i32
    %65 = arith.addi %64, %c1_i32_72 : i32
    %66 = arith.index_cast %65 : i32 to index
    %c0_73 = arith.constant 0 : index
    %c0_74 = arith.constant 0 : index
    %67 = vector.load %arg10[%66, %c0_73, %c0_74] : memref<18x16x128xbf16, #tpu.memory_space<vmem>>, vector<8x16x128xbf16>
    %68 = vector.shape_cast %67 : vector<8x16x128xbf16> to vector<128x128xbf16>
    %69 = arith.extf %68 : vector<128x128xbf16> to vector<128x128xf32>
    %70 = arith.addf %63, %69 : vector<128x128xf32>
    %cst_75 = arith.constant 0.000000e+00 : f32
    %71 = vector.broadcast %cst_75 : f32 to vector<128x128xf32>
    %72 = arith.maximumf %70, %71 : vector<128x128xf32>
    %73 = arith.truncf %72 : vector<128x128xf32> to vector<128x128xbf16>
    %c0_76 = arith.constant 0 : index
    %c0_77 = arith.constant 0 : index
    %c0_78 = arith.constant 0 : index
    %74 = vector.load %arg9[%c0_76, %c0_77, %c0_78] : memref<1x128x128xbf16, #tpu.memory_space<vmem>>, vector<1x128x128xbf16>
    %75 = vector.shape_cast %74 : vector<1x128x128xbf16> to vector<128x128xbf16>
    %76 = vector.shape_cast %73 : vector<128x128xbf16> to vector<1x128x128xbf16>
    tpu.vector_store %arg9[%c0_76, %c0_77, %c0_78], %76 {strides = array<i32>} : memref<1x128x128xbf16, #tpu.memory_space<vmem>>, vector<1x128x128xbf16>,
    return
  }
  func.func @transform_1(%arg0: i32, %arg1: i32) -> (i32, i32) {
    %c0_i32 = arith.constant 0 : i32
    %c0_i32_0 = arith.constant 0 : i32
    %c0_i32_1 = arith.constant 0 : i32
    return %c0_i32, %c0_i32_0 : i32, i32
  }
  func.func @transform_2(%arg0: i32, %arg1: i32) -> (i32, i32) {
    %c0_i32 = arith.constant 0 : i32
    %c0_i32_0 = arith.constant 0 : i32
    %c0_i32_1 = arith.constant 0 : i32
    return %c0_i32, %c0_i32_0 : i32, i32
  }
  func.func @transform_3(%arg0: i32, %arg1: i32) -> (i32, i32) {
    %c0_i32 = arith.constant 0 : i32
    %c0_i32_0 = arith.constant 0 : i32
    %c0_i32_1 = arith.constant 0 : i32
    return %c0_i32, %c0_i32_0 : i32, i32
  }
  func.func @transform_4(%arg0: i32, %arg1: i32) -> (i32, i32) {
    %c0_i32 = arith.constant 0 : i32
    %c0_i32_0 = arith.constant 0 : i32
    %c0_i32_1 = arith.constant 0 : i32
    return %c0_i32, %c0_i32_0 : i32, i32
  }
  func.func @transform_5(%arg0: i32, %arg1: i32) -> (i32, i32) {
    %c0_i32 = arith.constant 0 : i32
    %c0_i32_0 = arith.constant 0 : i32
    %c0_i32_1 = arith.constant 0 : i32
    return %c0_i32, %c0_i32_0 : i32, i32
  }
  func.func @transform_6(%arg0: i32, %arg1: i32) -> (i32, i32) {
    %c0_i32 = arith.constant 0 : i32
    %c0_i32_0 = arith.constant 0 : i32
    %c0_i32_1 = arith.constant 0 : i32
    return %c0_i32, %c0_i32_0 : i32, i32
  }
  func.func @transform_7(%arg0: i32, %arg1: i32) -> (i32, i32, i32) {
    %c0_i32 = arith.constant 0 : i32
    %c0_i32_0 = arith.constant 0 : i32
    return %arg0, %arg1, %c0_i32 : i32, i32, i32
  }
}

</mosaic_0001>

<bundles_post_ra>
// kernel: bottleneck_forward.1
= control target key start
LH: loop header
LB: loop body
LE: loop exit
PB: predicated region body
PF: predicated region fallthrough
CT: control target
= control target key end

     0   :  { %s4871_s0 = inlined_call_operand.vmem [shape: bf16[2,18,16,128], index: 0, kind: input, shape index: {}]   ;;  %s4872_s1 = inlined_call_operand.vmem [shape: bf16[128,128], index: 1, kind: input, shape index: {}]   ;;  %s4873_s2 = inlined_call_operand.vmem [shape: bf16[1152,128], index: 2, kind: input, shape index: {}]   ;;  %s4874_s3 = inlined_call_operand.vmem [shape: bf16[128,128], index: 3, kind: input, shape index: {}]   ;;  %s4875_s4 = inlined_call_operand.vmem [shape: f32[1,128], index: 4, kind: input, shape index: {}]   ;;  %s4876_s5 = inlined_call_operand.vmem [shape: f32[1,128], index: 5, kind: input, shape index: {}]   ;;  %s4877_s6 = inlined_call_operand.vmem [shape: f32[1,128], index: 6, kind: input, shape index: {}]   ;;  %s4878_s7 = inlined_call_operand.hbm [shape: bf16[2,256,128], index: 7, kind: output, shape index: {}]  }
   0x1   :  { %4880 = sst [smem:[#allocation11_spill]] %s4871_s0 }
   0x2   :  { %4881 = sst [smem:[#allocation12_spill]] %s4872_s1 }
   0x3   :  { %12 = vsyncpa [#allocation7], 0 }
   0x4   :  { %14 = vsyncpa [#allocation7 + $0x1], 0  ;;  %s4061_s24 = smov 0   ;;  %s4063_s25 = smov 0  }
   0x5   :  { %s4065_s26 = smov 0   ;;  %s4067_s27 = smov 0  }
   0x6   :  { %s4069_s28 = smov 0   ;;  %s4071_s29 = smov 0  }
   0x7   :  { %s4073_s30 = smov 0   ;;  %s4075_s8 = smov 0  }
   0x8 LB: > { %s2839_s9 = sadd.s32 4294967295, %s4015_s8   ;;  %s2840_s10 = sadd.s32 4294967294, %s4015_s8   ;;  %s4015_s8 = sphi %s4075_s8, %s20_s8   ;;  %s4011_s30 = sphi %s4073_s30, %s4893_s30   ;;  %s4007_s29 = sphi %s4071_s29, %s4892_s29   ;;  %s4003_s28 = sphi %s4069_s28, %s4891_s28   ;;  %s3999_s27 = sphi %s4067_s27, %s4890_s27   ;;  %s3995_s26 = sphi %s4065_s26, %s4889_s26   ;;  %s3991_s25 = sphi %s4063_s25, %s4888_s25   ;;  %s3987_s24 = sphi %s4061_s24, %s4887_s24  }
   0x9   : > { %s29_s11 = sadd.s32 1, %s4007_s29  ;;  %s32_s12 = sadd.s32 1, %s4011_s30 }
   0xa   : > { %p30_p0 = scmp.ge.s32.totalorder %s29_s11, 2  ;;  %p177_p1 = scmp.ne.s32.totalorder %s3995_s26, %s3991_s25 }
   0xb   : > { %p178_p2 = scmp.eq.s32.totalorder %s2839_s9, 3  ;;  %p183_p5 = scmp.ne.s32.totalorder %s3991_s25, %s3987_s24 }
   0xc   : > { %s4895_s11 = smov (%p30_p0, %s29_s11), 0  ;;  %s4897_s12 = smov (!%p30_p0, %s32_s12), %s4011_s30 }
   0xd   : > { %s163_s13 = ssub.s32 %s4007_s29, %s4895_s11  ;;  %p4112_p3 = por %p178_p2, %p177_p1 }
   0xe   : > { %p34_p4 = scmp.ge.s32.totalorder %s4897_s12, 2  ;;  %p184_p6 = scmp.eq.s32.totalorder %s2840_s10, 3 }
   0xf   : > { %p2842_p7 = scmp.ge.s32.totalorder %s4015_s8, 1  ;;  %p220_p9 = scmp.lt.s32.totalorder %s4015_s8, 5 }
  0x10   : > { %s4899_s12 = smov (%p34_p4, %s4897_s12), 0  ;;  %p4121_p8 = por %p184_p6, %p183_p5 }
  0x11   : > { %s162_s16 = ssub.s32 %s4011_s30, %s4899_s12  ;;  %s167_s17 = sadd.s32 1, %s3995_s26 }
  0x12   : > { %s164_s18 = sor.u32 %s163_s13, %s162_s16  ;;  %p221_p10 = pnand %p2842_p7, %p220_p9 }
  0x13   : > { %p165_p11 = scmp.eq.s32.totalorder %s164_s18, 0  ;;  %s4879_s20 = sand.u32 (!%p221_p10), 1, %s3991_s25  }
  0x14   : > { %224 = sbr.rel (%p221_p10) target bundleno = 1093 (0x445), region = 44  ;;  %s2843_s21 = sshll.u32 (!%p221_p10), %s4879_s20, 6 }
  0x15   : > { %s4130_s19 = scalar_select %p165_p11, %s3995_s26, %s167_s17  }
  0x16   : > { %s4135_s22 = scalar_lea.vmem (!%p221_p10), [#allocation6], %s2843_s21  ;;  %p2844_p12 = scmp.ne.s32.totalorder (!%p221_p10), %s3999_s27, 0 }
  0x19   : > { %249 = sbr.rel (%p2844_p12) target bundleno = 54 (0x36), region = 48  ;;  %s4884_s0 = sld [smem:[#allocation11_spill]] (!%p2844_p12) }
  0x1a   : > { %s3556_s23 = smul.u32 (!%p2844_p12), 144, %s4003_s28 }
  0x1f   : > { %s4144_s13 = scalar_lea.vmem %s4884_s0, %s3556_s23 }
  0x20   : > { %v263_v0 = vld [vmem:[%s4144_s13] sm:$0xff]  ;;  %v265_v1 = vld [vmem:[%s4144_s13 + $0x8] sm:$0xff]  ;;  %v267_v2 = vld [vmem:[%s4144_s13 + $0x10] sm:$0xff] }
  0x21   : > { %264 = vst [vmem:[#allocation2] sm:$0xff] %v263_v0  ;;  %v269_v3 = vld [vmem:[%s4144_s13 + $0x18] sm:$0xff]  ;;  %v271_v4 = vld [vmem:[%s4144_s13 + $0x20] sm:$0xff]  ;;  %v273_v5 = vld [vmem:[%s4144_s13 + $0x28] sm:$0xff] }
  0x22   : > { %266 = vst [vmem:[#allocation2 + $0x8] sm:$0xff] %v265_v1  ;;  %v275_v6 = vld [vmem:[%s4144_s13 + $0x30] sm:$0xff]  ;;  %v277_v7 = vld [vmem:[%s4144_s13 + $0x38] sm:$0xff]  ;;  %v279_v8 = vld [vmem:[%s4144_s13 + $0x40] sm:$0xff] }
  0x23   : > { %268 = vst [vmem:[#allocation2 + $0x10] sm:$0xff] %v267_v2  ;;  %v281_v9 = vld [vmem:[%s4144_s13 + $0x48] sm:$0xff]  ;;  %v283_v10 = vld [vmem:[%s4144_s13 + $0x50] sm:$0xff]  ;;  %v285_v11 = vld [vmem:[%s4144_s13 + $0x58] sm:$0xff] }
  0x24   : > { %270 = vst [vmem:[#allocation2 + $0x18] sm:$0xff] %v269_v3  ;;  %v287_v12 = vld [vmem:[%s4144_s13 + $0x60] sm:$0xff]  ;;  %v289_v13 = vld [vmem:[%s4144_s13 + $0x68] sm:$0xff]  ;;  %v291_v14 = vld [vmem:[%s4144_s13 + $0x70] sm:$0xff] }
  0x25   : > { %272 = vst [vmem:[#allocation2 + $0x20] sm:$0xff] %v271_v4  ;;  %v293_v15 = vld [vmem:[%s4144_s13 + $0x78] sm:$0xff]  ;;  %v295_v16 = vld [vmem:[%s4144_s13 + $0x80] sm:$0xff]  ;;  %v297_v17 = vld [vmem:[%s4144_s13 + $0x88] sm:$0xff] }
  0x26   : > { %274 = vst [vmem:[#allocation2 + $0x28] sm:$0xff] %v273_v5 }
  0x27   : > { %276 = vst [vmem:[#allocation2 + $0x30] sm:$0xff] %v275_v6 }
  0x28   : > { %278 = vst [vmem:[#allocation2 + $0x38] sm:$0xff] %v277_v7 }
  0x29   : > { %280 = vst [vmem:[#allocation2 + $0x40] sm:$0xff] %v279_v8 }
  0x2a   : > { %282 = vst [vmem:[#allocation2 + $0x48] sm:$0xff] %v281_v9 }
  0x2b   : > { %284 = vst [vmem:[#allocation2 + $0x50] sm:$0xff] %v283_v10 }
  0x2c   : > { %286 = vst [vmem:[#allocation2 + $0x58] sm:$0xff] %v285_v11 }
  0x2d   : > { %288 = vst [vmem:[#allocation2 + $0x60] sm:$0xff] %v287_v12 }
  0x2e   : > { %290 = vst [vmem:[#allocation2 + $0x68] sm:$0xff] %v289_v13 }
  0x2f   : > { %292 = vst [vmem:[#allocation2 + $0x70] sm:$0xff] %v291_v14 }
  0x30   : > { %294 = vst [vmem:[#allocation2 + $0x78] sm:$0xff] %v293_v15 }
  0x31   : > { %296 = vst [vmem:[#allocation2 + $0x80] sm:$0xff] %v295_v16 }
  0x32   : > { %298 = vst [vmem:[#allocation2 + $0x88] sm:$0xff] %v297_v17 }
  0x33   : > { %304 = vsyncadd [#allocation5], 2304 }
  0x34   : > { %3979 = dma.done.wait [#allocation5], 2304 }
  0x35   : > { %3980 = vsyncadd [#allocation5], 4294964992 }
  0x36 PF: > { %s4885_s1 = sld [smem:[#allocation12_spill]]  ;;  %s3558_s23 = sshll.u32 %s3999_s27, 6  ;;  %v4202_v34 = vld [vmem:[%s4875_s4] ss:$0 sm:$0xff] }
  0x37   : > { %s4189_s13 = scalar_lea.vmem [#allocation2], %s3558_s23 }
  0x39   : > { %v3559_v26 = vld [vmem:[%s4189_s13] sm:$0xff]  ;;  %v3560_v27 = vld [vmem:[%s4189_s13 + $0x8] sm:$0xff]  ;;  %v3561_v28 = vld [vmem:[%s4189_s13 + $0x10] sm:$0xff] }
  0x3a   : > { %v3562_v29 = vld [vmem:[%s4189_s13 + $0x18] sm:$0xff]  ;;  %v3563_v30 = vld [vmem:[%s4189_s13 + $0x20] sm:$0xff]  ;;  %v3564_v31 = vld [vmem:[%s4189_s13 + $0x28] sm:$0xff] }
  0x3b   : > { %v3565_v32 = vld [vmem:[%s4189_s13 + $0x30] sm:$0xff]  ;;  %v3566_v33 = vld [vmem:[%s4189_s13 + $0x38] sm:$0xff]  ;;  %v3567_v35 = vld [vmem:[%s4189_s13 + $0x40] sm:$0xff] }
  0x3c   : > { %v3576_v18 = vld [vmem:[%s4885_s1 + $0x38] sm:$0xff]  ;;  %v3575_v19 = vld [vmem:[%s4885_s1 + $0x30] sm:$0xff]  ;;  %v3574_v20 = vld [vmem:[%s4885_s1 + $0x28] sm:$0xff] }
  0x3d   : > { %462 = vmatpush.bf16.msra.mxu0 %v3576_v18  ;;  %v3573_v21 = vld [vmem:[%s4885_s1 + $0x20] sm:$0xff]  ;;  %v3572_v22 = vld [vmem:[%s4885_s1 + $0x18] sm:$0xff]  ;;  %v3571_v23 = vld [vmem:[%s4885_s1 + $0x10] sm:$0xff] }
  0x3e   : > { %v3570_v24 = vld [vmem:[%s4885_s1 + $0x8] sm:$0xff]  ;;  %v3569_v25 = vld [vmem:[%s4885_s1] sm:$0xff] }
  0x3f   : > { %v3568_v42 = vld [vmem:[%s4189_s13 + $0x48] sm:$0xff] }
  0x41   : > { %463 = vmatpush.bf16.msra.mxu0 %v3575_v19 }
  0x45   : > { %464 = vmatpush.bf16.msra.mxu0 %v3574_v20 }
  0x49   : > { %465 = vmatpush.bf16.msra.mxu0 %v3573_v21 }
  0x4d   : > { %466 = vmatpush.bf16.msra.mxu0 %v3572_v22 }
  0x51   : > { %467 = vmatpush.bf16.msra.mxu0 %v3571_v23 }
  0x55   : > { %468 = vmatpush.bf16.msra.mxu0 %v3570_v24 }
  0x59   : > { %469 = vmatpush.bf16.msra.mxu0 %v3569_v25 }
  0x5c   : > { %470 = vmatmul.bf16.vlgmr.msra.gmra.mxu0 %v3559_v26 }
  0x6c   : > { %475 = vmatmul.bf16.gmra.mxu0 %v3560_v27 }
  0x7c   : > { %480 = vmatmul.bf16.gmra.mxu0 %v3561_v28 }
  0x8c   : > { %485 = vmatmul.bf16.gmra.mxu0 %v3562_v29 }
  0x9c   : > { %490 = vmatmul.bf16.gmra.mxu0 %v3563_v30 }
  0xac   : > { %495 = vmatmul.bf16.gmra.mxu0 %v3564_v31 }
  0xbc   : > { %500 = vmatmul.bf16.gmra.mxu0 %v3565_v32 }
  0xcc   : > { %505 = vmatmul.bf16.gmra.mxu0 %v3566_v33 }
  0xd9   : > { %v471_v36 = vpop.f32.mrf.mxu0 }
  0xda   : > { %v472_v37 = vadd.f32 %v4202_v34, %v471_v36 }
  0xdc   : > { %v521_v38 = vmax.f32 %v472_v37, 0.0  ;;  %510 = vmatmul.bf16.gmra.mxu0 %v3567_v35 }
  0xde   : > { %541 = vst [vmem:[#allocation3 + $0x1] sm:$0xff] %v521_v38 }
  0xe1   : > { %v473_v39 = vpop.f32.mrf.mxu0 }
  0xe2   : > { %v474_v40 = vadd.f32 %v4202_v34, %v473_v39 }
  0xe4   : > { %v522_v41 = vmax.f32 %v474_v40, 0.0 }
  0xe6   : > { %542 = vst [vmem:[#allocation3 + $0x9] sm:$0xff] %v522_v41 }
  0xe9   : > { %v476_v43 = vpop.f32.mrf.mxu0 }
  0xea   : > { %v477_v44 = vadd.f32 %v4202_v34, %v476_v43 }
  0xec   : > { %v523_v45 = vmax.f32 %v477_v44, 0.0  ;;  %515 = vmatmul.bf16.gmra.mxu0 %v3568_v42 }
  0xee   : > { %543 = vst [vmem:[#allocation3 + $0x19] sm:$0xff] %v523_v45 }
  0xf1   : > { %v478_v46 = vpop.f32.mrf.mxu0 }
  0xf2   : > { %v479_v47 = vadd.f32 %v4202_v34, %v478_v46 }
  0xf4   : > { %v524_v48 = vmax.f32 %v479_v47, 0.0 }
  0xf6   : > { %544 = vst [vmem:[#allocation3 + $0x21] sm:$0xff] %v524_v48 }
  0xf9   : > { %v481_v49 = vpop.f32.mrf.mxu0 }
  0xfa   : > { %v482_v50 = vadd.f32 %v4202_v34, %v481_v49 }
  0xfc   : > { %v525_v51 = vmax.f32 %v482_v50, 0.0 }
  0xfe   : > { %545 = vst [vmem:[#allocation3 + $0x31] sm:$0xff] %v525_v51 }
 0x101   : > { %v483_v52 = vpop.f32.mrf.mxu0 }
 0x102   : > { %v484_v53 = vadd.f32 %v4202_v34, %v483_v52 }
 0x104   : > { %v526_v54 = vmax.f32 %v484_v53, 0.0 }
 0x106   : > { %546 = vst [vmem:[#allocation3 + $0x39] sm:$0xff] %v526_v54 }
 0x109   : > { %v486_v55 = vpop.f32.mrf.mxu0 }
 0x10a   : > { %v487_v56 = vadd.f32 %v4202_v34, %v486_v55 }
 0x10c   : > { %v527_v57 = vmax.f32 %v487_v56, 0.0 }
 0x10e   : > { %547 = vst [vmem:[#allocation3 + $0x49] sm:$0xff] %v527_v57 }
 0x111   : > { %v488_v58 = vpop.f32.mrf.mxu0 }
 0x112   : > { %v489_v59 = vadd.f32 %v4202_v34, %v488_v58 }
 0x114   : > { %v528_v60 = vmax.f32 %v489_v59, 0.0 }
 0x116   : > { %548 = vst [vmem:[#allocation3 + $0x51] sm:$0xff] %v528_v60 }
 0x119   : > { %v491_v61 = vpop.f32.mrf.mxu0 }
 0x11a   : > { %v492_v62 = vadd.f32 %v4202_v34, %v491_v61 }
 0x11c   : > { %v529_v63 = vmax.f32 %v492_v62, 0.0 }
 0x11e   : > { %549 = vst [vmem:[#allocation3 + $0x61] sm:$0xff] %v529_v63 }
 0x121   : > { %v493_v0 = vpop.f32.mrf.mxu0 }
 0x122   : > { %v494_v1 = vadd.f32 %v4202_v34, %v493_v0 }
 0x124   : > { %v530_v2 = vmax.f32 %v494_v1, 0.0 }
 0x126   : > { %550 = vst [vmem:[#allocation3 + $0x69] sm:$0xff] %v530_v2 }
 0x129   : > { %v496_v3 = vpop.f32.mrf.mxu0 }
 0x12a   : > { %v497_v4 = vadd.f32 %v4202_v34, %v496_v3 }
 0x12c   : > { %v531_v5 = vmax.f32 %v497_v4, 0.0 }
 0x12e   : > { %551 = vst [vmem:[#allocation3 + $0x79] sm:$0xff] %v531_v5 }
 0x131   : > { %v498_v6 = vpop.f32.mrf.mxu0 }
 0x132   : > { %v499_v7 = vadd.f32 %v4202_v34, %v498_v6 }
 0x134   : > { %v532_v8 = vmax.f32 %v499_v7, 0.0 }
 0x136   : > { %552 = vst [vmem:[#allocation3 + $0x81] sm:$0xff] %v532_v8 }
 0x139   : > { %v501_v9 = vpop.f32.mrf.mxu0 }
 0x13a   : > { %v502_v10 = vadd.f32 %v4202_v34, %v501_v9 }
 0x13c   : > { %v533_v11 = vmax.f32 %v502_v10, 0.0 }
 0x13e   : > { %553 = vst [vmem:[#allocation3 + $0x91] sm:$0xff] %v533_v11 }
 0x141   : > { %v503_v12 = vpop.f32.mrf.mxu0 }
 0x142   : > { %v504_v13 = vadd.f32 %v4202_v34, %v503_v12 }
 0x144   : > { %v534_v14 = vmax.f32 %v504_v13, 0.0 }
 0x146   : > { %554 = vst [vmem:[#allocation3 + $0x99] sm:$0xff] %v534_v14 }
 0x149   : > { %v506_v15 = vpop.f32.mrf.mxu0 }
 0x14a   : > { %v507_v16 = vadd.f32 %v4202_v34, %v506_v15 }
 0x14c   : > { %v535_v17 = vmax.f32 %v507_v16, 0.0 }
 0x14e   : > { %555 = vst [vmem:[#allocation3 + $0xa9] sm:$0xff] %v535_v17 }
 0x151   : > { %v508_v18 = vpop.f32.mrf.mxu0 }
 0x152   : > { %v509_v19 = vadd.f32 %v4202_v34, %v508_v18 }
 0x154   : > { %v536_v20 = vmax.f32 %v509_v19, 0.0 }
 0x156   : > { %556 = vst [vmem:[#allocation3 + $0xb1] sm:$0xff] %v536_v20 }
 0x159   : > { %v511_v21 = vpop.f32.mrf.mxu0 }
 0x15a   : > { %v512_v22 = vadd.f32 %v4202_v34, %v511_v21 }
 0x15c   : > { %v537_v23 = vmax.f32 %v512_v22, 0.0 }
 0x15e   : > { %557 = vst [vmem:[#allocation3 + $0xc1] sm:$0xff] %v537_v23 }
 0x161   : > { %v513_v24 = vpop.f32.mrf.mxu0 }
 0x162   : > { %v514_v25 = vadd.f32 %v4202_v34, %v513_v24 }
 0x164   : > { %v538_v26 = vmax.f32 %v514_v25, 0.0 }
 0x166   : > { %558 = vst [vmem:[#allocation3 + $0xc9] sm:$0xff] %v538_v26 }
 0x169   : > { %v516_v27 = vpop.f32.mrf.mxu0 }
 0x16a   : > { %v517_v28 = vadd.f32 %v4202_v34, %v516_v27 }
 0x16c   : > { %v539_v29 = vmax.f32 %v517_v28, 0.0 }
 0x16e   : > { %559 = vst [vmem:[#allocation3 + $0xd9] sm:$0xff] %v539_v29 }
 0x171   : > { %v518_v30 = vpop.f32.mrf.mxu0 }
 0x172   : > { %v519_v31 = vadd.f32 %v4202_v34, %v518_v30  ;;  %563 = sbr.rel (%p2844_p12) target bundleno = 399 (0x18f), region = 71 }
 0x174   : > { %v540_v32 = vmax.f32 %v519_v31, 0.0 }
 0x176   : > { %560 = vst [vmem:[#allocation3 + $0xe1] sm:$0xff] %v540_v32 }
 0x177   : > { %v4017_v33 = vmov 0.0  }
 0x178   : > { %564 = vst [vmem:[#allocation3] sm:$0x1] %v4017_v33 }
 0x179   : > { %565 = vst [vmem:[#allocation3 + $0x18] sm:$0x1] %v4017_v33 }
 0x17a   : > { %566 = vst [vmem:[#allocation3 + $0x30] sm:$0x1] %v4017_v33 }
 0x17b   : > { %567 = vst [vmem:[#allocation3 + $0x48] sm:$0x1] %v4017_v33 }
 0x17c   : > { %568 = vst [vmem:[#allocation3 + $0x60] sm:$0x1] %v4017_v33 }
 0x17d   : > { %569 = vst [vmem:[#allocation3 + $0x78] sm:$0x1] %v4017_v33 }
 0x17e   : > { %570 = vst [vmem:[#allocation3 + $0x90] sm:$0x1] %v4017_v33 }
 0x17f   : > { %571 = vst [vmem:[#allocation3 + $0xa8] sm:$0x1] %v4017_v33 }
 0x180   : > { %572 = vst [vmem:[#allocation3 + $0xc0] sm:$0x1] %v4017_v33 }
 0x181   : > { %573 = vst [vmem:[#allocation3 + $0xd8] sm:$0x1] %v4017_v33 }
 0x182   : > { %574 = vst [vmem:[#allocation3 + $0x11] sm:$0x1] %v4017_v33 }
 0x183   : > { %575 = vst [vmem:[#allocation3 + $0x29] sm:$0x1] %v4017_v33 }
 0x184   : > { %576 = vst [vmem:[#allocation3 + $0x41] sm:$0x1] %v4017_v33 }
 0x185   : > { %577 = vst [vmem:[#allocation3 + $0x59] sm:$0x1] %v4017_v33 }
 0x186   : > { %578 = vst [vmem:[#allocation3 + $0x71] sm:$0x1] %v4017_v33 }
 0x187   : > { %579 = vst [vmem:[#allocation3 + $0x89] sm:$0x1] %v4017_v33 }
 0x188   : > { %580 = vst [vmem:[#allocation3 + $0xa1] sm:$0x1] %v4017_v33 }
 0x189   : > { %581 = vst [vmem:[#allocation3 + $0xb9] sm:$0x1] %v4017_v33 }
 0x18a   : > { %582 = vst [vmem:[#allocation3 + $0xd1] sm:$0x1] %v4017_v33 }
 0x18b   : > { %583 = vst [vmem:[#allocation3 + $0xe9] sm:$0x1] %v4017_v33 }
 0x18c   : > { %584 = vst [vmem:[#allocation3] sm:$0xff] %v4017_v33 }
 0x18d   : > { %585 = vst [vmem:[#allocation3 + $0x8] sm:$0xff] %v4017_v33 }
 0x18e   : > { %586 = vst [vmem:[#allocation3 + $0x10] sm:$0x3] %v4017_v33 }
 0x18f PF: > { %p2922_p13 = scmp.ne.s32.totalorder %s3999_s27, 1 }
 0x191   : > { %590 = sbr.rel (%p2922_p13) target bundleno = 410 (0x19a), region = 75 }
 0x196   : > { %v4018_v34 = vmov 0.0  }
 0x197   : > { %592 = vst [vmem:[#allocation3 + $0xd8] sm:$0xff] %v4018_v34 }
 0x198   : > { %593 = vst [vmem:[#allocation3 + $0xe0] sm:$0xff] %v4018_v34 }
 0x199   : > { %594 = vst [vmem:[#allocation3 + $0xe8] sm:$0x3] %v4018_v34 }
 0x19a PF: > { %v3656_v35 = vld [vmem:[%s4873_s2 + $0x38] sm:$0xff]  ;;  %v3655_v39 = vld [vmem:[%s4873_s2 + $0x30] sm:$0xff]  ;;  %v3654_v43 = vld [vmem:[%s4873_s2 + $0x28] sm:$0xff]  ;;  %s3550_s23 = sshll.u32 %s3999_s27, 4  ;;  %s3551_s9 = sshll.u32 %s4003_s28, 5 }
 0x19b   : > { %v3664_v36 = vld [vmem:[%s4873_s2 + $0x78] sm:$0xff]  ;;  %2057 = vmatpush.bf16.msra.mxu1 %v3656_v35  ;;  %v3663_v40 = vld [vmem:[%s4873_s2 + $0x70] sm:$0xff]  ;;  %v3662_v44 = vld [vmem:[%s4873_s2 + $0x68] sm:$0xff]  ;;  %s2751_s10 = sadd.s32 %s3551_s9, %s3550_s23  ;;  %s2754_s27 = sshll.u32 %s4135_s22, 4  ;;  %s2755_s27 = int_to_ptr.vmem [resolvable:$true] %s2754_s27 }
 0x19c   : > { %v3704_v37 = vld [vmem:[%s4873_s2 + $0x1b8] sm:$0xff]  ;;  %2106 = vmatpush.bf16.msra.mxu2 %v3664_v36  ;;  %v3703_v41 = vld [vmem:[%s4873_s2 + $0x1b0] sm:$0xff]  ;;  %v3702_v45 = vld [vmem:[%s4873_s2 + $0x1a8] sm:$0xff]  ;;  %s3552_s0 = sshll.u32 %s2751_s10, 2  ;;  %s3939_s10 = scalar_lea.hbm %s4878_s7, 256 }
 0x19d   : > { %v3672_v38 = vld [vmem:[%s4873_s2 + $0xb8] sm:$0xff]  ;;  %2351 = vmatpush.bf16.msrb.mxu0 %v3704_v37  ;;  %v3671_v42 = vld [vmem:[%s4873_s2 + $0xb0] sm:$0xff]  ;;  %v3670_v46 = vld [vmem:[%s4873_s2 + $0xa8] sm:$0xff]  ;;  %s2753_s16 = scalar_lea.hbm %s4878_s7, %s3552_s0 }
 0x19e   : > { %2155 = vmatpush.bf16.msra.mxu3 %v3672_v38  ;;  %v3653_v47 = vld [vmem:[%s4873_s2 + $0x20] sm:$0xff]  ;;  %v595_v51 = vld [vmem:[#allocation3] sm:$0xff]  ;;  %v596_v52 = vld [vmem:[#allocation3 + $0x8] sm:$0xff]  ;;  %s2756_s28 = sshll.u32 %s2753_s16, 4  ;;  %s2757_s28 = int_to_ptr.hbm [resolvable:$true] %s2756_s28 }
 0x19f   : > { %2058 = vmatpush.bf16.msra.mxu1 %v3655_v39  ;;  %v3661_v48 = vld [vmem:[%s4873_s2 + $0x60] sm:$0xff]  ;;  %v611_v53 = vpack.c.bf16 %v595_v51, %v595_v51  ;;  %v643_v54 = vld [vmem:[#allocation3 + $0x1] sm:$0xff]  ;;  %v612_v56 = vpack.c.bf16 %v596_v52, %v596_v52  ;;  %v886_v60 = vld [vmem:[#allocation3 + $0x38] sm:$0xff]  ;;  %s3933_s18 = sshra.s32 %s2757_s28, 4  ;;  %s3934_s18 = int_to_ptr.hbm [resolvable:$true] %s3933_s18 }
 0x1a0   : > { %2107 = vmatpush.bf16.msra.mxu2 %v3663_v40  ;;  %v3701_v49 = vld [vmem:[%s4873_s2 + $0x1a0] sm:$0xff]  ;;  %v659_v57 = vpack.c.bf16 %v643_v54, %v643_v54  ;;  %v691_v62 = vld [vmem:[#allocation3 + $0x2] sm:$0xff]  ;;  %v4285_v2 = vpack.c.bf16 %v886_v60, %v886_v60  ;;  %v597_v3 = vld [vmem:[#allocation3 + $0x18] sm:$0xff]  ;;  %s3935_s21 = scalar_lea.hbm %s3934_s18, 64  ;;  %p3940_p4 = scmp.lt.s32.totalorder %s3934_s18, %s4878_s7 }
 0x1a1   : > { %2352 = vmatpush.bf16.msrb.mxu0 %v3703_v41  ;;  %v3669_v50 = vld [vmem:[%s4873_s2 + $0xa0] sm:$0xff]  ;;  %627 = vst [vmem:[#allocation4] sm:$0xf] %v611_v53  ;;  %v3652_v0 = vld [vmem:[%s4873_s2 + $0x18] sm:$0xff]  ;;  %v707_v6 = vpack.c.bf16 %v691_v62, %v691_v62  ;;  %v598_v7 = vld [vmem:[#allocation3 + $0x20] sm:$0xff]  ;;  %v4294_v10 = vpack.c.bf16 %v597_v3, %v597_v3  ;;  %p3936_p0 = scmp.ne.s32.totalorder %s3934_s18, %s3935_s21  ;;  %p3941_p5 = scmp.lt.s32.totalorder %s3939_s10, %s3935_s21 }
 0x1a2   : > { %2156 = vmatpush.bf16.msra.mxu3 %v3671_v42  ;;  %v644_v55 = vld [vmem:[#allocation3 + $0x9] sm:$0xff]  ;;  %628 = vst [vmem:[#allocation4 + $0x24] sm:$0xf] %v612_v56  ;;  %v645_v9 = vld [vmem:[#allocation3 + $0x19] sm:$0xff]  ;;  %v646_v11 = vld [vmem:[#allocation3 + $0x21] sm:$0xff]  ;;  %v4303_v14 = vpack.c.bf16 %v598_v7, %v598_v7 }
 0x1a3   : > { %2059 = vmatpush.bf16.msra.mxu1 %v3654_v43  ;;  %v660_v58 = vpack.c.bf16 %v644_v55, %v644_v55  ;;  %v885_v59 = vld [vmem:[#allocation3 + $0x30] sm:$0xff]  ;;  %v3660_v1 = vld [vmem:[%s4873_s2 + $0x58] sm:$0xff]  ;;  %675 = vst [vmem:[#allocation4 + $0x4] sm:$0xf] %v659_v57  ;;  %v3651_v12 = vld [vmem:[%s4873_s2 + $0x10] sm:$0xff]  ;;  %v4311_v18 = vpack.c.bf16 %v645_v9, %v645_v9  ;;  %v4313_v20 = vpack.c.bf16 %v646_v11, %v646_v11  ;;  %p3937_p1 = pnand %p3936_p0, %p4112_p3  ;;  %p3942_p6 = por %p3941_p5, %p3940_p4 }
 0x1a4   : > { %2108 = vmatpush.bf16.msra.mxu2 %v3662_v44  ;;  %v4277_v61 = vpack.c.bf16 %v885_v59, %v885_v59  ;;  %v692_v63 = vld [vmem:[#allocation3 + $0xa] sm:$0xff]  ;;  %v3659_v13 = vld [vmem:[%s4873_s2 + $0x50] sm:$0xff]  ;;  %918 = vst [vmem:[#allocation4 + $0x3c] sm:$0xf] %v4285_v2  ;;  %v3650_v24 = vld [vmem:[%s4873_s2 + $0x8] sm:$0xff] }
 0x1a5   : > { %2353 = vmatpush.bf16.msrb.mxu0 %v3702_v45  ;;  %v3700_v4 = vld [vmem:[%s4873_s2 + $0x198] sm:$0xff]  ;;  %676 = vst [vmem:[#allocation4 + $0x28] sm:$0xf] %v660_v58  ;;  %v708_v8 = vpack.c.bf16 %v692_v63, %v692_v63  ;;  %v3699_v16 = vld [vmem:[%s4873_s2 + $0x190] sm:$0xff]  ;;  %v888_v19 = vld [vmem:[#allocation3 + $0x50] sm:$0xff]  ;;  %p3938_p2 = pneg %p3937_p1 }
 0x1a6   : > { %2157 = vmatpush.bf16.msra.mxu3 %v3670_v46  ;;  %v3668_v5 = vld [vmem:[%s4873_s2 + $0x98] sm:$0xff]  ;;  %917 = vst [vmem:[#allocation4 + $0x18] sm:$0xf] %v4277_v61  ;;  %v3667_v17 = vld [vmem:[%s4873_s2 + $0x90] sm:$0xff]  ;;  %v3658_v25 = vld [vmem:[%s4873_s2 + $0x48] sm:$0xff]  ;;  %v4325_v26 = vpack.c.bf16 %v888_v19, %v888_v19 }
 0x1a7   : > { %2060 = vmatpush.bf16.msra.mxu1 %v3653_v47  ;;  %v887_v15 = vld [vmem:[#allocation3 + $0x48] sm:$0xff]  ;;  %723 = vst [vmem:[#allocation4 + $0x8] sm:$0xf] %v707_v6  ;;  %v693_v21 = vld [vmem:[#allocation3 + $0x1a] sm:$0xff]  ;;  %v3649_v30 = vld [vmem:[%s4873_s2] sm:$0xff]  ;;  %p3943_p7 = pnand %p3942_p6, %p3938_p2 }
 0x1a8   : > { %2109 = vmatpush.bf16.msra.mxu2 %v3661_v48  ;;  %724 = vst [vmem:[#allocation4 + $0x2c] sm:$0xf] %v708_v8  ;;  %v4316_v22 = vpack.c.bf16 %v887_v15, %v887_v15  ;;  %v694_v23 = vld [vmem:[#allocation3 + $0x22] sm:$0xff]  ;;  %v3698_v27 = vld [vmem:[%s4873_s2 + $0x188] sm:$0xff]  ;;  %v4334_v29 = vpack.c.bf16 %v693_v21, %v693_v21  ;;  %v3657_v31 = vld [vmem:[%s4873_s2 + $0x40] sm:$0xff] }
 0x1a9   : > { %2354 = vmatpush.bf16.msrb.mxu0 %v3701_v49  ;;  %629 = vst [vmem:[#allocation4 + $0x48] sm:$0xf] %v4294_v10  ;;  %v3666_v28 = vld [vmem:[%s4873_s2 + $0x88] sm:$0xff]  ;;  %v2925_v32 = vld [vmem:[#allocation4] sm:$0xf]  ;;  %v4343_v35 = vpack.c.bf16 %v694_v23, %v694_v23  ;;  %v889_v41 = vld [vmem:[#allocation3 + $0x60] sm:$0xff] }
 0x1aa   : > { %2158 = vmatpush.bf16.msra.mxu3 %v3669_v50  ;;  %630 = vst [vmem:[#allocation4 + $0x6c] sm:$0xf] %v4303_v14  ;;  %v3581_v33 = vld [vmem:[#allocation4 + $0x20] sm:$0xf0]  ;;  %v648_v37 = vld [vmem:[#allocation3 + $0x39] sm:$0xff]  ;;  %v890_v42 = vld [vmem:[#allocation3 + $0x68] sm:$0xff]  ;;  %v905_v54 = vpack.c.bf16 %v889_v41, %v889_v41 }
 0x1ab   : > { %2061 = vmatpush.bf16.msra.mxu1 %v3652_v0  ;;  %677 = vst [vmem:[#allocation4 + $0x4c] sm:$0xf] %v4311_v18  ;;  %v3577_v34 = vld [vmem:[#allocation4 + $0x4] sm:$0xf]  ;;  %v3584_v44 = vld [vmem:[#allocation4 + $0x38] sm:$0xf0]  ;;  %v4363_v50 = vpack.c.bf16 %v648_v37, %v648_v37  ;;  %v2926_v52 = vor.u32 %v3581_v33, %v2925_v32  ;;  %v906_v58 = vpack.c.bf16 %v890_v42, %v890_v42 }
 0x1ac   : > { %2110 = vmatpush.bf16.msra.mxu2 %v3660_v1  ;;  %678 = vst [vmem:[#allocation4 + $0x70] sm:$0xf] %v4313_v20  ;;  %v647_v36 = vld [vmem:[#allocation3 + $0x31] sm:$0xff]  ;;  %v3688_v48 = vld [vmem:[%s4873_s2 + $0x138] sm:$0xff]  ;;  %v696_v55 = vld [vmem:[#allocation3 + $0x3a] sm:$0xff] }
 0x1ad   : > { %2355 = vmatpush.bf16.msrb.mxu0 %v3700_v4  ;;  %v3697_v38 = vld [vmem:[%s4873_s2 + $0x180] sm:$0xff]  ;;  %v2927_v40 = vld [vmem:[#allocation4 + $0x24] sm:$0xf0]  ;;  %919 = vst [vmem:[#allocation4 + $0x60] sm:$0xf] %v4316_v22  ;;  %v4354_v47 = vpack.c.bf16 %v647_v36, %v647_v36  ;;  %v3680_v49 = vld [vmem:[%s4873_s2 + $0xf8] sm:$0xff]  ;;  %v4377_v62 = vpack.c.bf16 %v696_v55, %v696_v55 }
 0x1ae   : > { %2159 = vmatpush.bf16.msra.mxu3 %v3668_v5  ;;  %v3665_v39 = vld [vmem:[%s4873_s2 + $0x80] sm:$0xff]  ;;  %v2949_v43 = vld [vmem:[#allocation4 + $0x18] sm:$0xf]  ;;  %920 = vst [vmem:[#allocation4 + $0x84] sm:$0xf] %v4325_v26  ;;  %v2930_v53 = vor.u32 %v3577_v34, %v2927_v40  ;;  %v3687_v60 = vld [vmem:[%s4873_s2 + $0x130] sm:$0xff] }
 0x1af   : > { %2062 = vmatpush.bf16.msra.mxu1 %v3651_v12  ;;  %v2933_v45 = vld [vmem:[#allocation4 + $0x8] sm:$0xf]  ;;  %v3582_v46 = vld [vmem:[#allocation4 + $0x28] sm:$0xf0]  ;;  %725 = vst [vmem:[#allocation4 + $0x50] sm:$0xf] %v4334_v29  ;;  %v2950_v56 = vor.u32 %v3584_v44, %v2949_v43 }
 0x1b0   : > { %2111 = vmatpush.bf16.msra.mxu2 %v3659_v13  ;;  %726 = vst [vmem:[#allocation4 + $0x74] sm:$0xf] %v4343_v35  ;;  %v695_v51 = vld [vmem:[#allocation3 + $0x32] sm:$0xff]  ;;  %v2934_v57 = vor.u32 %v3582_v46, %v2933_v45  ;;  %v649_v1 = vld [vmem:[#allocation3 + $0x49] sm:$0xff]  ;;  %v892_v6 = vld [vmem:[#allocation3 + $0x80] sm:$0xff] }
 0x1b1   : > { %2356 = vmatpush.bf16.msrb.mxu0 %v3699_v16  ;;  %631 = vst [vmem:[#allocation4 + $0x90] sm:$0xf] %v4277_v61  ;;  %v4368_v59 = vpack.c.bf16 %v695_v51, %v695_v51  ;;  %v3679_v61 = vld [vmem:[%s4873_s2 + $0xf0] sm:$0xff]  ;;  %v3686_v63 = vld [vmem:[%s4873_s2 + $0x128] sm:$0xff]  ;;  %v4389_v3 = vpack.c.bf16 %v649_v1, %v649_v1  ;;  %v908_v8 = vpack.c.bf16 %v892_v6, %v892_v6  ;;  %v697_v9 = vld [vmem:[#allocation3 + $0x4a] sm:$0xff] }
 0x1b2   : > { %2160 = vmatpush.bf16.msra.mxu3 %v3667_v17  ;;  %632 = vst [vmem:[#allocation4 + $0xb4] sm:$0xf] %v4285_v2  ;;  %v3678_v0 = vld [vmem:[%s4873_s2 + $0xe8] sm:$0xff]  ;;  %v4394_v15 = vpack.c.bf16 %v697_v9, %v697_v9  ;;  %v651_v32 = vld [vmem:[#allocation3 + $0x61] sm:$0xff]  ;;  %v652_v33 = vld [vmem:[#allocation3 + $0x69] sm:$0xff] }
 0x1b3   : > { %2063 = vmatpush.bf16.msra.mxu1 %v3650_v24  ;;  %679 = vst [vmem:[#allocation4 + $0x94] sm:$0xf] %v4354_v47  ;;  %v650_v2 = vld [vmem:[#allocation3 + $0x51] sm:$0xff]  ;;  %v3590_v13 = vld [vmem:[#allocation4 + $0x68] sm:$0xf0]  ;;  %v4411_v34 = vpack.c.bf16 %v651_v32, %v651_v32  ;;  %v4413_v36 = vpack.c.bf16 %v652_v33, %v652_v33  ;;  %v699_v40 = vld [vmem:[#allocation3 + $0x62] sm:$0xff] }
 0x1b4   : > { %2112 = vmatpush.bf16.msra.mxu2 %v3658_v25  ;;  %680 = vst [vmem:[#allocation4 + $0xb8] sm:$0xf] %v4363_v50  ;;  %v4391_v4 = vpack.c.bf16 %v650_v2, %v650_v2  ;;  %v891_v5 = vld [vmem:[#allocation3 + $0x78] sm:$0xff]  ;;  %v2963_v17 = vld [vmem:[#allocation4 + $0x6c] sm:$0xf0]  ;;  %v700_v41 = vld [vmem:[#allocation3 + $0x6a] sm:$0xff]  ;;  %v4418_v42 = vpack.c.bf16 %v699_v40, %v699_v40 }
 0x1b5   : > { %2357 = vmatpush.bf16.msrb.mxu0 %v3698_v27  ;;  %921 = vst [vmem:[#allocation4 + $0xa8] sm:$0xf] %v905_v54  ;;  %v907_v7 = vpack.c.bf16 %v891_v5, %v891_v5  ;;  %v698_v11 = vld [vmem:[#allocation3 + $0x52] sm:$0xff]  ;;  %v3586_v16 = vld [vmem:[#allocation4 + $0x4c] sm:$0xf]  ;;  %v4421_v44 = vpack.c.bf16 %v700_v41, %v700_v41  ;;  %v3684_v55 = vld [vmem:[%s4873_s2 + $0x118] sm:$0xff] }
 0x1b6   : > { %2161 = vmatpush.bf16.msra.mxu3 %v3666_v28  ;;  %922 = vst [vmem:[#allocation4 + $0xcc] sm:$0xf] %v906_v58  ;;  %v2961_v12 = vld [vmem:[#allocation4 + $0x48] sm:$0xf]  ;;  %v4397_v19 = vpack.c.bf16 %v698_v11, %v698_v11  ;;  %v2985_v21 = vld [vmem:[#allocation4 + $0x60] sm:$0xf] }
 0x1b7   : > { %2064 = vmatpush.bf16.msra.mxu1 %v3649_v30  ;;  %727 = vst [vmem:[#allocation4 + $0x98] sm:$0xf] %v4368_v59  ;;  %v2969_v23 = vld [vmem:[#allocation4 + $0x50] sm:$0xf]  ;;  %v3591_v24 = vld [vmem:[#allocation4 + $0x70] sm:$0xf0]  ;;  %v2962_v25 = vor.u32 %v3590_v13, %v2961_v12 }
 0x1b8   : > { %2113 = vmatpush.bf16.msra.mxu2 %v3657_v31  ;;  %728 = vst [vmem:[#allocation4 + $0xbc] sm:$0xf] %v4377_v62  ;;  %v2970_v28 = vor.u32 %v3591_v24, %v2969_v23  ;;  %v3685_v30 = vld [vmem:[%s4873_s2 + $0x120] sm:$0xff]  ;;  %v894_v37 = vld [vmem:[#allocation3 + $0x98] sm:$0xff]  ;;  %v702_v2 = vld [vmem:[#allocation3 + $0x82] sm:$0xff] }
 0x1b9   : > { %2358 = vmatpush.bf16.msrb.mxu0 %v3697_v38  ;;  %633 = vst [vmem:[#allocation4 + $0xd8] sm:$0xf] %v4316_v22  ;;  %v3593_v22 = vld [vmem:[#allocation4 + $0x80] sm:$0xf0]  ;;  %v701_v1 = vld [vmem:[#allocation3 + $0x7a] sm:$0xff]  ;;  %v4461_v24 = vld [vmem:[%s4873_s2 + $0x1f8] sm:$0xff] }
 0x1ba   : > { %2162 = vmatpush.bf16.msra.mxu3 %v3665_v39  ;;  %2065 = vmatmul.bf16.vlgmr.msra.gmra.mxu1 %v2926_v52  ;;  %634 = vst [vmem:[#allocation4 + $0xfc] sm:$0xf] %v4325_v26  ;;  %v2966_v26 = vor.u32 %v3586_v16, %v2963_v17  ;;  %v2986_v27 = vor.u32 %v3593_v22, %v2985_v21  ;;  %v3677_v31 = vld [vmem:[%s4873_s2 + $0xe0] sm:$0xff]  ;;  %v3683_v22 = vld [vmem:[%s4873_s2 + $0x110] sm:$0xff] }
 0x1bb   : > { %2204 = vmatpush.bf16.msrb.mxu1 %v3680_v49  ;;  %2114 = vmatmul.bf16.vlgmr.msra.gmra.mxu2 %v2930_v53  ;;  %635 = vst [vmem:[#allocation4 + $0x120] sm:$0xf] %v905_v54  ;;  %v910_v39 = vpack.c.bf16 %v894_v37, %v894_v37  ;;  %v2999_v43 = vld [vmem:[#allocation4 + $0xb4] sm:$0xf0]  ;;  %v4443_v5 = vpack.c.bf16 %v701_v1, %v701_v1  ;;  %v3675_v23 = vld [vmem:[%s4873_s2 + $0xd0] sm:$0xff] }
 0x1bc   : > { %2253 = vmatpush.bf16.msrb.mxu2 %v3688_v48  ;;  %2359 = vmatmul.bf16.vlgmr.msrb.gmra.mxu0 %v2950_v56  ;;  %681 = vst [vmem:[#allocation4 + $0xdc] sm:$0xf] %v4389_v3  ;;  %v3021_v45 = vld [vmem:[#allocation4 + $0xa8] sm:$0xf]  ;;  %v3676_v56 = vld [vmem:[%s4873_s2 + $0xd8] sm:$0xff] }
 0x1bd   : > { %2163 = vmatmul.bf16.vlgmr.msra.gmra.mxu3 %v2934_v57  ;;  %682 = vst [vmem:[#allocation4 + $0x100] sm:$0xf] %v4391_v4  ;;  %v3602_v46 = vld [vmem:[#allocation4 + $0xc8] sm:$0xf0]  ;;  %v654_v57 = vld [vmem:[#allocation3 + $0x81] sm:$0xff]  ;;  %2400 = vmatpush.bf16.msra.mxu0 %v4461_v24 }
 0x1be   : > { %923 = vst [vmem:[#allocation4 + $0xf0] sm:$0xf] %v907_v7  ;;  %v3005_v48 = vld [vmem:[#allocation4 + $0x98] sm:$0xf]  ;;  %v3022_v53 = vor.u32 %v3602_v46, %v3021_v45  ;;  %v704_v32 = vld [vmem:[#allocation3 + $0x9a] sm:$0xff]  ;;  %v4492_v46 = vld [vmem:[%s4873_s2 + $0x1e0] sm:$0xff] }
 0x1bf   : > { %2205 = vmatpush.bf16.msrb.mxu1 %v3679_v61  ;;  %924 = vst [vmem:[#allocation4 + $0x114] sm:$0xf] %v908_v8  ;;  %v3600_v49 = vld [vmem:[#allocation4 + $0xb8] sm:$0xf0]  ;;  %v896_v61 = vld [vmem:[#allocation3 + $0xb0] sm:$0xff] }
 0x1c0   : > { %2254 = vmatpush.bf16.msrb.mxu2 %v3687_v60  ;;  %729 = vst [vmem:[#allocation4 + $0xe0] sm:$0xf] %v4394_v15  ;;  %v3006_v54 = vor.u32 %v3600_v49, %v3005_v48  ;;  %v3682_v48 = vld [vmem:[%s4873_s2 + $0x108] sm:$0xff]  ;;  %v4510_v49 = vld [vmem:[%s4873_s2 + $0x1d8] sm:$0xff] }
 0x1c1   : > { %730 = vst [vmem:[#allocation4 + $0x104] sm:$0xf] %v4397_v19 }
 0x1c2   : > { %636 = vst [vmem:[#allocation4 + $0x144] sm:$0xf] %v906_v58  ;;  %v895_v58 = vld [vmem:[#allocation3 + $0xa8] sm:$0xff]  ;;  %v3069_v33 = vld [vmem:[#allocation4 + $0x120] sm:$0xf] }
 0x1c3   : > { %2206 = vmatpush.bf16.msrb.mxu1 %v3678_v0  ;;  %637 = vst [vmem:[#allocation4 + $0x168] sm:$0xf] %v907_v7  ;;  %v912_v0 = vpack.c.bf16 %v896_v61, %v896_v61  ;;  %v3604_v6 = vld [vmem:[#allocation4 + $0xdc] sm:$0xf] }
 0x1c4   : > { %2255 = vmatpush.bf16.msrb.mxu2 %v3686_v63  ;;  %638 = vst [vmem:[#allocation4 + $0x18c] sm:$0xf] %v908_v8  ;;  %v911_v63 = vpack.c.bf16 %v895_v58, %v895_v58  ;;  %v3035_v7 = vld [vmem:[#allocation4 + $0xfc] sm:$0xf0]  ;;  %v4446_v8 = vpack.c.bf16 %v702_v2, %v702_v2 }
 0x1c5   : > { %772 = vst [vmem:[#allocation4 + $0xc] sm:$0xf] %v4294_v10  ;;  %v893_v10 = vld [vmem:[#allocation3 + $0x90] sm:$0xff]  ;;  %v3057_v9 = vld [vmem:[#allocation4 + $0xf0] sm:$0xf]  ;;  %v3038_v16 = vor.u32 %v3604_v6, %v3035_v7 }
 0x1c6   : > { %773 = vst [vmem:[#allocation4 + $0x30] sm:$0xf] %v4303_v14  ;;  %v909_v38 = vpack.c.bf16 %v893_v10, %v893_v10  ;;  %v2997_v14 = vld [vmem:[#allocation4 + $0x90] sm:$0xf]  ;;  %v3611_v11 = vld [vmem:[#allocation4 + $0x110] sm:$0xf0] }
 0x1c7   : > { %2207 = vmatpush.bf16.msrb.mxu1 %v3677_v31  ;;  %820 = vst [vmem:[#allocation4 + $0x10] sm:$0xf] %v4311_v18  ;;  %v3599_v18 = vld [vmem:[#allocation4 + $0xb0] sm:$0xf0]  ;;  %v3041_v12 = vld [vmem:[#allocation4 + $0xe0] sm:$0xf]  ;;  %v3058_v17 = vor.u32 %v3611_v11, %v3057_v9 }
 0x1c8   : > { %2256 = vmatpush.bf16.msrb.mxu2 %v3685_v30  ;;  %821 = vst [vmem:[#allocation4 + $0x34] sm:$0xf] %v4313_v20  ;;  %v3595_v20 = vld [vmem:[#allocation4 + $0x94] sm:$0xf]  ;;  %v2998_v51 = vor.u32 %v3599_v18, %v2997_v14  ;;  %v3609_v13 = vld [vmem:[#allocation4 + $0x100] sm:$0xf0] }
 0x1c9   : > { %965 = vst [vmem:[#allocation4 + $0x1c] sm:$0xf] %v4354_v47  ;;  %v3002_v52 = vor.u32 %v3595_v20, %v2999_v43  ;;  %v3042_v21 = vor.u32 %v3609_v13, %v3041_v12  ;;  %v898_v30 = vld [vmem:[#allocation3 + $0xc8] sm:$0xff]  ;;  %v703_v31 = vld [vmem:[#allocation3 + $0x92] sm:$0xff] }
 0x1ca   : > { %2070 = vmatmul.bf16.gmra.mxu1 %v2962_v25  ;;  %966 = vst [vmem:[#allocation4 + $0x40] sm:$0xf] %v4363_v50  ;;  %v656_v25 = vld [vmem:[#allocation3 + $0x99] sm:$0xff]  ;;  %v3617_v10 = vld [vmem:[#allocation4 + $0x140] sm:$0xf0]  ;;  %v719_v37 = vpack.c.bf16 %v703_v31, %v703_v31  ;;  %v705_v58 = vld [vmem:[#allocation3 + $0xaa] sm:$0xff] }
 0x1cb   : > { %2119 = vmatmul.bf16.gmra.mxu2 %v2966_v26  ;;  %683 = vst [vmem:[#allocation4 + $0x124] sm:$0xf] %v4411_v34  ;;  %2208 = vmatpush.bf16.msrb.mxu1 %v3676_v56  ;;  %v897_v26 = vld [vmem:[#allocation3 + $0xc0] sm:$0xff]  ;;  %v3070_v18 = vor.u32 %v3617_v10, %v3069_v33  ;;  %v706_v2 = vld [vmem:[#allocation3 + $0xb2] sm:$0xff] }
 0x1cc   : > { %2364 = vmatmul.bf16.gmra.mxu0 %v2986_v27  ;;  %684 = vst [vmem:[#allocation4 + $0x148] sm:$0xf] %v4413_v36  ;;  %2257 = vmatpush.bf16.msrb.mxu2 %v3684_v55  ;;  %v4530_v11 = vld [vmem:[%s4873_s2 + $0x1c8] sm:$0xff]  ;;  %v3693_v12 = vld [vmem:[%s4873_s2 + $0x160] sm:$0xff] }
 0x1cd   : > { %2168 = vmatmul.bf16.gmra.mxu3 %v2970_v28  ;;  %925 = vst [vmem:[#allocation4 + $0x138] sm:$0xf] %v909_v38  ;;  %v672_v28 = vpack.c.bf16 %v656_v25, %v656_v25  ;;  %v3673_v25 = vld [vmem:[%s4873_s2 + $0xc0] sm:$0xff] }
 0x1ce   : > { %926 = vst [vmem:[#allocation4 + $0x15c] sm:$0xf] %v910_v39 }
 0x1cf   : > { %731 = vst [vmem:[#allocation4 + $0x128] sm:$0xf] %v4418_v42  ;;  %2209 = vmatpush.bf16.msrb.mxu1 %v3675_v23  ;;  %v3720_v23 = vld [vmem:[%s4873_s2 + $0x238] sm:$0xff] }
 0x1d0   : > { %732 = vst [vmem:[#allocation4 + $0x14c] sm:$0xf] %v4421_v44  ;;  %2258 = vmatpush.bf16.msrb.mxu2 %v3683_v22  ;;  %v3681_v22 = vld [vmem:[%s4873_s2 + $0x100] sm:$0xff] }
 0x1d1   : > { %639 = vst [vmem:[#allocation4 + $0x1b0] sm:$0xf] %v909_v38 }
 0x1d2   : > { %640 = vst [vmem:[#allocation4 + $0x1d4] sm:$0xf] %v910_v39  ;;  %v3613_v38 = vld [vmem:[#allocation4 + $0x124] sm:$0xf] }
 0x1d3   : > { %868 = vst [vmem:[#allocation4 + $0x14] sm:$0xf] %v4334_v29  ;;  %v653_v29 = vld [vmem:[#allocation3 + $0x79] sm:$0xff] }
 0x1d4   : > { %869 = vst [vmem:[#allocation4 + $0x38] sm:$0xf] %v4343_v35  ;;  %v4436_v60 = vpack.c.bf16 %v653_v29, %v653_v29  ;;  %v4438_v35 = vpack.c.bf16 %v654_v57, %v654_v57  ;;  %v3071_v39 = vld [vmem:[#allocation4 + $0x144] sm:$0xf0]  ;;  %v3093_v40 = vld [vmem:[#allocation4 + $0x138] sm:$0xf]  ;;  %2259 = vmatpush.bf16.msrb.mxu2 %v3682_v48 }
 0x1d5   : > { %822 = vst [vmem:[#allocation4 + $0x58] sm:$0xf] %v4354_v47  ;;  %v3033_v47 = vld [vmem:[#allocation4 + $0xd8] sm:$0xf]  ;;  %v3620_v41 = vld [vmem:[#allocation4 + $0x158] sm:$0xf0]  ;;  %v3074_v20 = vor.u32 %v3613_v38, %v3071_v39 }
 0x1d6   : > { %823 = vst [vmem:[#allocation4 + $0x7c] sm:$0xf] %v4363_v50  ;;  %v3608_v50 = vld [vmem:[#allocation4 + $0xf8] sm:$0xf0]  ;;  %v3094_v43 = vor.u32 %v3620_v41, %v3093_v40  ;;  %v899_v29 = vld [vmem:[#allocation3 + $0xd8] sm:$0xff]  ;;  %v900_v57 = vld [vmem:[#allocation3 + $0xe0] sm:$0xff] }
 0x1d7   : > { %1013 = vst [vmem:[#allocation4 + $0x20] sm:$0xf] %v4368_v59  ;;  %v3618_v14 = vld [vmem:[#allocation4 + $0x148] sm:$0xf0]  ;;  %v916_v1 = vpack.c.bf16 %v900_v57, %v900_v57  ;;  %v3713_v57 = vld [vmem:[%s4873_s2 + $0x200] sm:$0xff] }
 0x1d8   : > { %1014 = vst [vmem:[#allocation4 + $0x44] sm:$0xf] %v4377_v62  ;;  %2260 = vmatpush.bf16.msrb.mxu2 %v3681_v22 }
 0x1d9   : > { %870 = vst [vmem:[#allocation4 + $0x5c] sm:$0xf] %v4368_v59  ;;  %v3034_v59 = vor.u32 %v3608_v50, %v3033_v47 }
 0x1da   : > { %2075 = vmatmul.bf16.gmra.mxu1 %v2998_v51  ;;  %685 = vst [vmem:[#allocation4 + $0x16c] sm:$0xf] %v4436_v60  ;;  %v3695_v51 = vld [vmem:[%s4873_s2 + $0x170] sm:$0xff] }
 0x1db   : > { %2124 = vmatmul.bf16.gmra.mxu2 %v3002_v52  ;;  %686 = vst [vmem:[#allocation4 + $0x190] sm:$0xf] %v4438_v35  ;;  %v4519_v52 = vld [vmem:[%s4873_s2 + $0x1d0] sm:$0xff] }
 0x1dc   : > { %2369 = vmatmul.bf16.gmra.mxu0 %v3022_v53  ;;  %927 = vst [vmem:[#allocation4 + $0x180] sm:$0xf] %v911_v63  ;;  %v657_v53 = vld [vmem:[#allocation3 + $0xa9] sm:$0xff]  ;;  %3825 = vmatpush.bf16.msra.mxu2 %v3720_v23 }
 0x1dd   : > { %2173 = vmatmul.bf16.gmra.mxu3 %v3006_v54  ;;  %928 = vst [vmem:[#allocation4 + $0x1a4] sm:$0xf] %v912_v0  ;;  %v658_v54 = vld [vmem:[#allocation3 + $0xb1] sm:$0xff]  ;;  %v673_v55 = vpack.c.bf16 %v657_v53, %v657_v53 }
 0x1de   : > { %733 = vst [vmem:[#allocation4 + $0x170] sm:$0xf] %v4443_v5  ;;  %v674_v56 = vpack.c.bf16 %v658_v54, %v658_v54 }
 0x1df   : > { %734 = vst [vmem:[#allocation4 + $0x194] sm:$0xf] %v4446_v8 }
 0x1e0   : > { %641 = vst [vmem:[#allocation4 + $0x1f8] sm:$0xf] %v911_v63  ;;  %v3694_v63 = vld [vmem:[%s4873_s2 + $0x168] sm:$0xff] }
 0x1e1   : > { %642 = vst [vmem:[#allocation4 + $0x21c] sm:$0xf] %v912_v0  ;;  %v3622_v61 = vld [vmem:[#allocation4 + $0x16c] sm:$0xf]  ;;  %v915_v0 = vpack.c.bf16 %v899_v29, %v899_v29 }
 0x1e2   : > { %871 = vst [vmem:[#allocation4 + $0x80] sm:$0xf] %v4377_v62  ;;  %v4469_v62 = vld [vmem:[%s4873_s2 + $0x1f0] sm:$0xff] }
 0x1e3   : > { %824 = vst [vmem:[#allocation4 + $0xa0] sm:$0xf] %v4389_v3  ;;  %v655_v3 = vld [vmem:[#allocation3 + $0x91] sm:$0xff]  ;;  %2401 = vmatpush.bf16.msra.mxu0 %v4469_v62  ;;  %v3107_v47 = vld [vmem:[#allocation4 + $0x18c] sm:$0xf0] }
 0x1e4   : > { %825 = vst [vmem:[#allocation4 + $0xc4] sm:$0xf] %v4391_v4  ;;  %v671_v27 = vpack.c.bf16 %v655_v3, %v655_v3  ;;  %v4472_v4 = vpack.c.bf16 %v897_v26, %v897_v26  ;;  %v3129_v50 = vld [vmem:[#allocation4 + $0x180] sm:$0xf]  ;;  %v3629_v6 = vld [vmem:[#allocation4 + $0x1a0] sm:$0xf0] }
 0x1e5   : > { %872 = vst [vmem:[#allocation4 + $0xa4] sm:$0xf] %v4394_v15  ;;  %v4475_v15 = vpack.c.bf16 %v898_v30, %v898_v30  ;;  %v3113_v7 = vld [vmem:[#allocation4 + $0x170] sm:$0xf]  ;;  %v3692_v3 = vld [vmem:[%s4873_s2 + $0x158] sm:$0xff]  ;;  %v3690_v30 = vld [vmem:[%s4873_s2 + $0x148] sm:$0xff] }
 0x1e6   : > { %873 = vst [vmem:[#allocation4 + $0xc8] sm:$0xf] %v4397_v19  ;;  %v4482_v19 = vld [vmem:[%s4873_s2 + $0x1e8] sm:$0xff]  ;;  %v3627_v9 = vld [vmem:[#allocation4 + $0x190] sm:$0xf0] }
 0x1e7   : > { %826 = vst [vmem:[#allocation4 + $0xe8] sm:$0xf] %v4411_v34  ;;  %v720_v34 = vpack.c.bf16 %v704_v32, %v704_v32  ;;  %2402 = vmatpush.bf16.msra.mxu0 %v4482_v19  ;;  %v3719_v26 = vld [vmem:[%s4873_s2 + $0x230] sm:$0xff]  ;;  %v3177_v48 = vld [vmem:[#allocation4 + $0x1f8] sm:$0xf] }
 0x1e8   : > { %827 = vst [vmem:[#allocation4 + $0x10c] sm:$0xf] %v4413_v36  ;;  %v3077_v36 = vld [vmem:[#allocation4 + $0x128] sm:$0xf]  ;;  %3826 = vmatpush.bf16.msra.mxu2 %v3719_v26 }
 0x1e9   : > { %687 = vst [vmem:[#allocation4 + $0x1b4] sm:$0xf] %v671_v27  ;;  %v3078_v45 = vor.u32 %v3618_v14, %v3077_v36  ;;  %v3716_v36 = vld [vmem:[%s4873_s2 + $0x218] sm:$0xff]  ;;  %v742_v14 = vld [vmem:[#allocation3 + $0x30] sm:$0xff] }
 0x1ea   : > { %2080 = vmatmul.bf16.gmra.mxu1 %v3034_v59  ;;  %688 = vst [vmem:[#allocation4 + $0x1d8] sm:$0xf] %v672_v28  ;;  %v3110_v59 = vor.u32 %v3622_v61, %v3107_v47  ;;  %v3580_v47 = vld [vmem:[#allocation4 + $0x1c] sm:$0xf] }
 0x1eb   : > { %2129 = vmatmul.bf16.gmra.mxu2 %v3038_v16  ;;  %929 = vst [vmem:[#allocation4 + $0x1c8] sm:$0xf] %v4472_v4  ;;  %2403 = vmatpush.bf16.msra.mxu0 %v4492_v46  ;;  %v3130_v16 = vor.u32 %v3629_v6, %v3129_v50  ;;  %v2951_v50 = vld [vmem:[#allocation4 + $0x3c] sm:$0xf0]  ;;  %v2943_v6 = vld [vmem:[#allocation4 + $0x34] sm:$0xf0] }
 0x1ec   : > { %2374 = vmatmul.bf16.gmra.mxu0 %v3058_v17  ;;  %930 = vst [vmem:[#allocation4 + $0x1ec] sm:$0xf] %v4475_v15  ;;  %v3114_v17 = vor.u32 %v3627_v9, %v3113_v7  ;;  %v4596_v7 = vld [vmem:[%s4876_s5] ss:$0 sm:$0xff] }
 0x1ed   : > { %2178 = vmatmul.bf16.gmra.mxu3 %v3042_v21  ;;  %735 = vst [vmem:[#allocation4 + $0x1b8] sm:$0xf] %v719_v37  ;;  %v4539_v21 = vld [vmem:[%s4873_s2 + $0x1c0] sm:$0xff] }
 0x1ee   : > { %736 = vst [vmem:[#allocation4 + $0x1dc] sm:$0xf] %v720_v34 }
 0x1ef   : > { %874 = vst [vmem:[#allocation4 + $0xec] sm:$0xf] %v4418_v42  ;;  %v3696_v42 = vld [vmem:[%s4873_s2 + $0x178] sm:$0xff]  ;;  %2404 = vmatpush.bf16.msra.mxu0 %v4510_v49 }
 0x1f0   : > { %875 = vst [vmem:[#allocation4 + $0x110] sm:$0xf] %v4421_v44  ;;  %v3674_v44 = vld [vmem:[%s4873_s2 + $0xc8] sm:$0xff]  ;;  %2302 = vmatpush.bf16.msrb.mxu3 %v3696_v42  ;;  %v3631_v31 = vld [vmem:[#allocation4 + $0x1b4] sm:$0xf] }
 0x1f1   : > { %828 = vst [vmem:[#allocation4 + $0x130] sm:$0xf] %v4436_v60  ;;  %2210 = vmatpush.bf16.msrb.mxu1 %v3674_v44  ;;  %v3105_v60 = vld [vmem:[#allocation4 + $0x168] sm:$0xf]  ;;  %v3143_v32 = vld [vmem:[#allocation4 + $0x1d4] sm:$0xf0] }
 0x1f2   : > { %829 = vst [vmem:[#allocation4 + $0x154] sm:$0xf] %v4438_v35  ;;  %v3626_v35 = vld [vmem:[#allocation4 + $0x188] sm:$0xf0]  ;;  %v3165_v33 = vld [vmem:[#allocation4 + $0x1c8] sm:$0xf]  ;;  %v3146_v39 = vor.u32 %v3631_v31, %v3143_v32 }
 0x1f3   : > { %876 = vst [vmem:[#allocation4 + $0x134] sm:$0xf] %v4443_v5  ;;  %v721_v5 = vpack.c.bf16 %v705_v58, %v705_v58  ;;  %2405 = vmatpush.bf16.msra.mxu0 %v4519_v52  ;;  %v3106_v13 = vor.u32 %v3626_v35, %v3105_v60  ;;  %v3638_v10 = vld [vmem:[#allocation4 + $0x1e8] sm:$0xf0]  ;;  %v3644_v42 = vld [vmem:[#allocation4 + $0x218] sm:$0xf0] }
 0x1f4   : > { %877 = vst [vmem:[#allocation4 + $0x158] sm:$0xf] %v4446_v8  ;;  %2303 = vmatpush.bf16.msrb.mxu3 %v3695_v51  ;;  %v722_v8 = vpack.c.bf16 %v706_v2, %v706_v2  ;;  %v3166_v40 = vor.u32 %v3638_v10, %v3165_v33  ;;  %v745_v60 = vld [vmem:[#allocation3 + $0x50] sm:$0xff]  ;;  %v3583_v2 = vld [vmem:[#allocation4 + $0x30] sm:$0xf0] }
 0x1f5   : > { %830 = vst [vmem:[#allocation4 + $0x178] sm:$0xf] %v671_v27  ;;  %v3691_v27 = vld [vmem:[%s4873_s2 + $0x150] sm:$0xff]  ;;  %2211 = vmatpush.bf16.msrb.mxu1 %v3673_v25  ;;  %v761_v61 = vpack.c.bf16 %v745_v60, %v745_v60  ;;  %v3592_v32 = vld [vmem:[#allocation4 + $0x78] sm:$0xf0] }
 0x1f6   : > { %831 = vst [vmem:[#allocation4 + $0x19c] sm:$0xf] %v672_v28  ;;  %v3718_v28 = vld [vmem:[%s4873_s2 + $0x228] sm:$0xff]  ;;  %v2957_v33 = vld [vmem:[#allocation4 + $0x20] sm:$0xf] }
 0x1f7   : > { %878 = vst [vmem:[#allocation4 + $0x17c] sm:$0xf] %v719_v37  ;;  %2406 = vmatpush.bf16.msra.mxu0 %v4530_v11  ;;  %v3636_v37 = vld [vmem:[#allocation4 + $0x1d8] sm:$0xf0]  ;;  %3827 = vmatpush.bf16.msra.mxu2 %v3718_v28  ;;  %v3597_v60 = vld [vmem:[#allocation4 + $0xa4] sm:$0xf] }
 0x1f8   : > { %879 = vst [vmem:[#allocation4 + $0x1a0] sm:$0xf] %v720_v34  ;;  %2304 = vmatpush.bf16.msrb.mxu3 %v3694_v63  ;;  %v3717_v34 = vld [vmem:[%s4873_s2 + $0x220] sm:$0xff]  ;;  %v3578_v63 = vld [vmem:[#allocation4 + $0xc] sm:$0xf] }
 0x1f9   : > { %786 = vst [vmem:[#allocation4 + $0x204] sm:$0xf] %v4472_v4  ;;  %3817 = vmatpush.bf16.msra.mxu1 %v4461_v24  ;;  %v3141_v4 = vld [vmem:[#allocation4 + $0x1b0] sm:$0xf]  ;;  %v3149_v24 = vld [vmem:[#allocation4 + $0x1b8] sm:$0xf] }
 0x1fa   : > { %2085 = vmatmul.bf16.gmra.mxu1 %v3070_v18  ;;  %689 = vst [vmem:[#allocation4 + $0x1fc] sm:$0xf] %v673_v55  ;;  %v3150_v41 = vor.u32 %v3636_v37, %v3149_v24  ;;  %v743_v18 = vld [vmem:[#allocation3 + $0x38] sm:$0xff]  ;;  %v3585_v24 = vld [vmem:[#allocation4 + $0x40] sm:$0xf0] }
 0x1fb   : > { %2134 = vmatmul.bf16.gmra.mxu2 %v3074_v20  ;;  %690 = vst [vmem:[#allocation4 + $0x220] sm:$0xf] %v674_v56  ;;  %2407 = vmatpush.bf16.msra.mxu0 %v4539_v21  ;;  %v758_v20 = vpack.c.bf16 %v742_v14, %v742_v14  ;;  %v3588_v37 = vld [vmem:[#allocation4 + $0x5c] sm:$0xf] }
 0x1fc   : > { %2379 = vmatmul.bf16.gmra.mxu0 %v3094_v43  ;;  %931 = vst [vmem:[#allocation4 + $0x210] sm:$0xf] %v915_v0  ;;  %2305 = vmatpush.bf16.msrb.mxu3 %v3693_v12  ;;  %v759_v43 = vpack.c.bf16 %v743_v18, %v743_v18  ;;  %v2935_v0 = vld [vmem:[#allocation4 + $0x2c] sm:$0xf0]  ;;  %v2954_v12 = vor.u32 %v3580_v47, %v2951_v50 }
 0x1fd   : > { %2183 = vmatmul.bf16.gmra.mxu3 %v3078_v45  ;;  %932 = vst [vmem:[#allocation4 + $0x234] sm:$0xf] %v916_v1  ;;  %3818 = vmatpush.bf16.msra.mxu1 %v4469_v62  ;;  %v3689_v62 = vld [vmem:[%s4873_s2 + $0x140] sm:$0xff]  ;;  %v3714_v45 = vld [vmem:[%s4873_s2 + $0x208] sm:$0xff]  ;;  %v2941_v1 = vld [vmem:[#allocation4 + $0x10] sm:$0xf] }
 0x1fe   : > { %737 = vst [vmem:[#allocation4 + $0x200] sm:$0xf] %v721_v5  ;;  %3828 = vmatpush.bf16.msra.mxu2 %v3717_v34  ;;  %v2942_v9 = vor.u32 %v3583_v2, %v2941_v1 }
 0x1ff   : > { %738 = vst [vmem:[#allocation4 + $0x224] sm:$0xf] %v722_v8  ;;  %2449 = vmatpush.bf16.msrb.mxu0 %v3720_v23  ;;  %v746_v23 = vld [vmem:[#allocation3 + $0x60] sm:$0xff] }
 0x200   : > { %832 = vst [vmem:[#allocation4 + $0x1c0] sm:$0xf] %v673_v55  ;;  %2306 = vmatpush.bf16.msrb.mxu3 %v3692_v3  ;;  %v747_v3 = vld [vmem:[#allocation3 + $0x68] sm:$0xff] }
 0x201   : > { %833 = vst [vmem:[#allocation4 + $0x1e4] sm:$0xf] %v674_v56  ;;  %3819 = vmatpush.bf16.msra.mxu1 %v4482_v19  ;;  %v3715_v19 = vld [vmem:[%s4873_s2 + $0x210] sm:$0xff]  ;;  %v3178_v56 = vor.u32 %v3644_v42, %v3177_v48 }
 0x202   : > { %880 = vst [vmem:[#allocation4 + $0x1c4] sm:$0xf] %v721_v5  ;;  %3829 = vmatpush.bf16.msra.mxu2 %v3716_v36  ;;  %v3179_v44 = vld [vmem:[#allocation4 + $0x21c] sm:$0xf0]  ;;  %v3579_v5 = vld [vmem:[#allocation4 + $0x14] sm:$0xf] }
 0x203   : > { %881 = vst [vmem:[#allocation4 + $0x1e8] sm:$0xf] %v722_v8  ;;  %2450 = vmatpush.bf16.msrb.mxu0 %v3719_v26  ;;  %v3201_v51 = vld [vmem:[#allocation4 + $0x210] sm:$0xf]  ;;  %v2938_v8 = vor.u32 %v3578_v63, %v2935_v0  ;;  %v762_v26 = vpack.c.bf16 %v746_v23, %v746_v23 }
 0x204   : > { %787 = vst [vmem:[#allocation4 + $0x228] sm:$0xf] %v4475_v15  ;;  %2307 = vmatpush.bf16.msrb.mxu3 %v3691_v27  ;;  %v3635_v15 = vld [vmem:[#allocation4 + $0x1d0] sm:$0xf0]  ;;  %v763_v27 = vpack.c.bf16 %v747_v3, %v747_v3 }
 0x205   : > { %v3142_v38 = vor.u32 %v3635_v15, %v3141_v4  ;;  %3820 = vmatpush.bf16.msra.mxu1 %v4492_v46  ;;  %774 = vst [vmem:[#allocation4 + $0x54] sm:$0xf] %v758_v20  ;;  %v3640_v46 = vld [vmem:[#allocation4 + $0x1fc] sm:$0xf]  ;;  %v3647_v53 = vld [vmem:[#allocation4 + $0x230] sm:$0xf0] }
 0x206   : > { %775 = vst [vmem:[#allocation4 + $0x78] sm:$0xf] %v759_v43  ;;  %v3185_v54 = vld [vmem:[#allocation4 + $0x200] sm:$0xf]  ;;  %v3645_v55 = vld [vmem:[#allocation4 + $0x220] sm:$0xf0]  ;;  %3830 = vmatpush.bf16.msra.mxu2 %v3715_v19  ;;  %v3182_v29 = vor.u32 %v3640_v46, %v3179_v44 }
 0x207   : > { %2451 = vmatpush.bf16.msrb.mxu0 %v3718_v28  ;;  %v3186_v58 = vor.u32 %v3645_v55, %v3185_v54  ;;  %777 = vst [vmem:[#allocation4 + $0xc0] sm:$0xf] %v761_v61  ;;  %v2977_v15 = vld [vmem:[#allocation4 + $0x58] sm:$0xf]  ;;  %v748_v46 = vld [vmem:[#allocation3 + $0x78] sm:$0xff]  ;;  %v749_v44 = vld [vmem:[#allocation3 + $0x80] sm:$0xff] }
 0x208   : > { %2308 = vmatpush.bf16.msrb.mxu3 %v3690_v30  ;;  %778 = vst [vmem:[#allocation4 + $0xe4] sm:$0xf] %v762_v26  ;;  %v765_v54 = vpack.c.bf16 %v749_v44, %v749_v44 }
 0x209   : > { %3821 = vmatpush.bf16.msra.mxu1 %v4510_v49  ;;  %v3202_v49 = vor.u32 %v3647_v53, %v3201_v51  ;;  %779 = vst [vmem:[#allocation4 + $0x108] sm:$0xf] %v763_v27  ;;  %v764_v53 = vpack.c.bf16 %v748_v46, %v748_v46  ;;  %v3049_v27 = vld [vmem:[#allocation4 + $0xe8] sm:$0xf] }
 0x20a   : > { %2090 = vmatmul.bf16.gmra.mxu1 %v3106_v13  ;;  %3831 = vmatpush.bf16.msra.mxu2 %v3714_v45  ;;  %v2946_v13 = vor.u32 %v3579_v5, %v2943_v6  ;;  %781 = vst [vmem:[#allocation4 + $0x150] sm:$0xf] %v765_v54 }
 0x20b   : > { %2139 = vmatmul.bf16.gmra.mxu2 %v3110_v59  ;;  %2452 = vmatpush.bf16.msrb.mxu0 %v3717_v34  ;;  %780 = vst [vmem:[#allocation4 + $0x12c] sm:$0xf] %v764_v53 }
 0x20c   : > { %2384 = vmatmul.bf16.gmra.mxu0 %v3130_v16  ;;  %2309 = vmatpush.bf16.msrb.mxu3 %v3689_v62  ;;  %v3587_v4 = vld [vmem:[#allocation4 + $0x54] sm:$0xf]  ;;  %v2978_v62 = vor.u32 %v3592_v32, %v2977_v15  ;;  %v3051_v32 = vld [vmem:[#allocation4 + $0x10c] sm:$0xf0] }
 0x20d   : > { %2188 = vmatmul.bf16.gmra.mxu3 %v3114_v17  ;;  %3822 = vmatpush.bf16.msra.mxu1 %v4519_v52  ;;  %v744_v52 = vld [vmem:[#allocation3 + $0x48] sm:$0xff] }
 0x20e   : > { %3832 = vmatpush.bf16.msra.mxu2 %v3713_v57  ;;  %v760_v35 = vpack.c.bf16 %v744_v52, %v744_v52  ;;  %v2971_v31 = vld [vmem:[#allocation4 + $0x74] sm:$0xf0] }
 0x20f   : > { %2453 = vmatpush.bf16.msrb.mxu0 %v3716_v36 }
 0x210   : > { %776 = vst [vmem:[#allocation4 + $0x9c] sm:$0xf] %v760_v35  ;;  %v3015_v35 = vld [vmem:[#allocation4 + $0xc4] sm:$0xf0] }
 0x211   : > { %3823 = vmatpush.bf16.msra.mxu1 %v4530_v11  ;;  %v3018_v50 = vor.u32 %v3597_v60, %v3015_v35  ;;  %v3043_v26 = vld [vmem:[#allocation4 + $0x104] sm:$0xf0]  ;;  %v3079_v54 = vld [vmem:[#allocation4 + $0x14c] sm:$0xf0] }
 0x212   : > { %v3614_v53 = vld [vmem:[#allocation4 + $0x12c] sm:$0xf] }
 0x213   : > { %2454 = vmatpush.bf16.msrb.mxu0 %v3715_v19  ;;  %v2958_v19 = vor.u32 %v3585_v24, %v2957_v33 }
 0x215   : > { %3824 = vmatpush.bf16.msra.mxu1 %v4539_v21 }
 0x217   : > { %2455 = vmatpush.bf16.msrb.mxu0 %v3714_v45 }
 0x21a   : > { %2095 = vmatmul.bf16.gmra.mxu1 %v3142_v38  ;;  %v2979_v38 = vld [vmem:[#allocation4 + $0x7c] sm:$0xf0] }
 0x21b   : > { %2144 = vmatmul.bf16.gmra.mxu2 %v3146_v39  ;;  %2456 = vmatpush.bf16.msrb.mxu0 %v3713_v57  ;;  %v2982_v14 = vor.u32 %v3588_v37, %v2979_v38  ;;  %v3007_v57 = vld [vmem:[#allocation4 + $0xbc] sm:$0xf0] }
 0x21c   : > { %2389 = vmatmul.bf16.gmra.mxu0 %v3166_v40 }
 0x21d   : > { %2193 = vmatmul.bf16.gmra.mxu3 %v3150_v41  ;;  %v2974_v41 = vor.u32 %v3587_v4, %v2971_v31  ;;  %v3610_v4 = vld [vmem:[#allocation4 + $0x108] sm:$0xf0] }
 0x21e   : > { %v3606_v31 = vld [vmem:[#allocation4 + $0xec] sm:$0xf]  ;;  %v3050_v38 = vor.u32 %v3610_v4, %v3049_v27  ;;  %v850_v27 = vld [vmem:[#allocation3 + $0xc2] sm:$0xff]  ;;  %v851_v4 = vld [vmem:[#allocation3 + $0xca] sm:$0xff] }
 0x22a   : > { %2100 = vmatmul.bf16.gmra.mxu1 %v3178_v56 }
 0x22b   : > { %2149 = vmatmul.bf16.gmra.mxu2 %v3182_v29  ;;  %v3596_v29 = vld [vmem:[#allocation4 + $0x9c] sm:$0xf] }
 0x22c   : > { %2394 = vmatmul.bf16.gmra.mxu0 %v3202_v49  ;;  %v3013_v49 = vld [vmem:[#allocation4 + $0xa0] sm:$0xf]  ;;  %v3010_v1 = vor.u32 %v3596_v29, %v3007_v57  ;;  %v3085_v29 = vld [vmem:[#allocation4 + $0x130] sm:$0xf]  ;;  %v3619_v57 = vld [vmem:[#allocation4 + $0x150] sm:$0xf0] }
 0x22d   : > { %2198 = vmatmul.bf16.gmra.mxu3 %v3186_v58  ;;  %v3601_v58 = vld [vmem:[#allocation4 + $0xc0] sm:$0xf0] }
 0x22e   : > { %v3014_v2 = vor.u32 %v3601_v58, %v3013_v49  ;;  %v3615_v58 = vld [vmem:[#allocation4 + $0x134] sm:$0xf] }
 0x237   : > { %v2066_v11 = vpop.f32.mrf.mxu1 }
 0x238   : > { %v2067_v16 = vadd.f32 %v4596_v7, %v2066_v11 }
 0x239   : > { %v4598_v59 = vpop.f32.mrf.mxu0 }
 0x23a   : > { %2212 = vmatmul.bf16.vlgmr.msrb.gmra.mxu1 %v2938_v8 }
 0x23b   : > { %2261 = vmatmul.bf16.vlgmr.msrb.gmra.mxu2 %v2942_v9 }
 0x23c   : > { %2408 = vmatmul.bf16.vlgmr.msra.gmra.mxu0 %v2954_v12 }
 0x23d   : > { %2310 = vmatmul.bf16.vlgmr.msrb.gmra.mxu3 %v2946_v13  ;;  %v750_v13 = vld [vmem:[#allocation3 + $0x90] sm:$0xff] }
 0x23e   : > { %v2115_v17 = vpop.f32.mrf.mxu2 }
 0x23f   : > { %v2116_v21 = vadd.f32 %v2115_v17, %v2067_v16  ;;  %v2068_v25 = vpop.f32.mrf.mxu1  ;;  %v751_v16 = vld [vmem:[#allocation3 + $0x98] sm:$0xff] }
 0x240   : > { %v2164_v22 = vpop.f32.mrf.mxu3  ;;  %v2069_v10 = vadd.f32 %v4596_v7, %v2068_v25  ;;  %v3605_v25 = vld [vmem:[#allocation4 + $0xe4] sm:$0xf] }
 0x241   : > { %v4601_v28 = vadd.f32 %v2164_v22, %v2116_v21  ;;  %v4603_v30 = vpop.f32.mrf.mxu0  ;;  %v766_v21 = vpack.c.bf16 %v750_v13, %v750_v13  ;;  %v767_v22 = vpack.c.bf16 %v751_v16, %v751_v16  ;;  %v3046_v37 = vor.u32 %v3605_v25, %v3043_v26  ;;  %v802_v13 = vld [vmem:[#allocation3 + $0xc1] sm:$0xff]  ;;  %v803_v16 = vld [vmem:[#allocation3 + $0xc9] sm:$0xff] }
 0x243   : > { %782 = vst [vmem:[#allocation4 + $0x174] sm:$0xf] %v766_v21  ;;  %v818_v21 = vpack.c.bf16 %v802_v13, %v802_v13  ;;  %v3633_v13 = vld [vmem:[#allocation4 + $0x1c4] sm:$0xf] }
 0x244   : > { %783 = vst [vmem:[#allocation4 + $0x198] sm:$0xf] %v767_v22  ;;  %v819_v22 = vpack.c.bf16 %v803_v16, %v803_v16  ;;  %v3159_v16 = vld [vmem:[#allocation4 + $0x1e4] sm:$0xf0] }
 0x245   : > { %834 = vst [vmem:[#allocation4 + $0x208] sm:$0xf] %v818_v21 }
 0x246   : > { %v2117_v39 = vpop.f32.mrf.mxu2  ;;  %835 = vst [vmem:[#allocation4 + $0x22c] sm:$0xf] %v819_v22 }
 0x247   : > { %v2118_v34 = vadd.f32 %v2117_v39, %v2069_v10  ;;  %v2071_v36 = vpop.f32.mrf.mxu1  ;;  %977 = vst [vmem:[#allocation4 + $0x1cc] sm:$0xf] %v818_v21 }
 0x248   : > { %v2166_v40 = vpop.f32.mrf.mxu3  ;;  %v2072_v43 = vadd.f32 %v4596_v7, %v2071_v36  ;;  %978 = vst [vmem:[#allocation4 + $0x1f0] sm:$0xf] %v819_v22 }
 0x249   : > { %v4606_v18 = vadd.f32 %v2166_v40, %v2118_v34  ;;  %v4608_v20 = vpop.f32.mrf.mxu0  ;;  %v3054_v34 = vor.u32 %v3606_v31, %v3051_v32  ;;  %v867_v31 = vpack.c.bf16 %v851_v4, %v851_v4 }
 0x24a   : > { %2217 = vmatmul.bf16.gmra.mxu1 %v2974_v41  ;;  %v3623_v32 = vld [vmem:[#allocation4 + $0x174] sm:$0xf] }
 0x24b   : > { %2266 = vmatmul.bf16.gmra.mxu2 %v2978_v62  ;;  %883 = vst [vmem:[#allocation4 + $0x230] sm:$0xf] %v867_v31 }
 0x24c   : > { %2457 = vmatmul.bf16.vlgmr.msrb.gmra.mxu0 %v2958_v19  ;;  %1026 = vst [vmem:[#allocation4 + $0x1f4] sm:$0xf] %v867_v31 }
 0x24d   : > { %2315 = vmatmul.bf16.gmra.mxu3 %v2982_v14 }
 0x24e   : > { %v2120_v45 = vpop.f32.mrf.mxu2 }
 0x24f   : > { %v2121_v48 = vadd.f32 %v2120_v45, %v2072_v43  ;;  %v2073_v51 = vpop.f32.mrf.mxu1  ;;  %v752_v43 = vld [vmem:[#allocation3 + $0xa8] sm:$0xff]  ;;  %v753_v45 = vld [vmem:[#allocation3 + $0xb0] sm:$0xff] }
 0x250   : > { %v2169_v42 = vpop.f32.mrf.mxu3  ;;  %v2074_v52 = vadd.f32 %v4596_v7, %v2073_v51  ;;  %v769_v46 = vpack.c.bf16 %v753_v45, %v753_v45 }
 0x251   : > { %v4611_v55 = vadd.f32 %v2169_v42, %v2121_v48  ;;  %v4613_v56 = vpop.f32.mrf.mxu0  ;;  %v768_v42 = vpack.c.bf16 %v752_v43, %v752_v43 }
 0x252   : > { %785 = vst [vmem:[#allocation4 + $0x1e0] sm:$0xf] %v769_v46 }
 0x253   : > { %784 = vst [vmem:[#allocation4 + $0x1bc] sm:$0xf] %v768_v42 }
 0x256   : > { %v2122_v61 = vpop.f32.mrf.mxu2 }
 0x257   : > { %v2123_v63 = vadd.f32 %v2122_v61, %v2074_v52  ;;  %v2076_v47 = vpop.f32.mrf.mxu1  ;;  %v3087_v52 = vld [vmem:[#allocation4 + $0x154] sm:$0xf0] }
 0x258   : > { %v2171_v0 = vpop.f32.mrf.mxu3  ;;  %v2077_v8 = vadd.f32 %v4596_v7, %v2076_v47 }
 0x259   : > { %v4616_v5 = vadd.f32 %v2171_v0, %v2123_v63  ;;  %v4618_v6 = vpop.f32.mrf.mxu0  ;;  %v3082_v63 = vor.u32 %v3614_v53, %v3079_v54  ;;  %v3086_v0 = vor.u32 %v3619_v57, %v3085_v29  ;;  %v935_v29 = vld [vmem:[#allocation3 + $0x49] sm:$0xff]  ;;  %v936_v57 = vld [vmem:[#allocation3 + $0x51] sm:$0xff] }
 0x25a   : > { %2222 = vmatmul.bf16.gmra.mxu1 %v3010_v1 }
 0x25b   : > { %2271 = vmatmul.bf16.gmra.mxu2 %v3014_v2  ;;  %v3090_v2 = vor.u32 %v3615_v58, %v3087_v52  ;;  %v951_v52 = vpack.c.bf16 %v935_v29, %v935_v29 }
 0x25d   : > { %2320 = vmatmul.bf16.gmra.mxu3 %v3018_v50  ;;  %967 = vst [vmem:[#allocation4 + $0x64] sm:$0xf] %v951_v52  ;;  %v3187_v52 = vld [vmem:[#allocation4 + $0x224] sm:$0xf0] }
 0x25e   : > { %v2125_v9 = vpop.f32.mrf.mxu2 }
 0x25f   : > { %v2126_v11 = vadd.f32 %v2125_v9, %v2077_v8  ;;  %v2078_v17 = vpop.f32.mrf.mxu1 }
 0x260   : > { %v2174_v12 = vpop.f32.mrf.mxu3  ;;  %v2079_v15 = vadd.f32 %v4596_v7, %v2078_v17 }
 0x261   : > { %v4621_v23 = vadd.f32 %v2174_v12, %v2126_v11  ;;  %v4623_v3 = vpop.f32.mrf.mxu0 }
 0x266   : > { %v2127_v33 = vpop.f32.mrf.mxu2 }
 0x267   : > { %v2128_v10 = vadd.f32 %v2127_v33, %v2079_v15  ;;  %v2081_v39 = vpop.f32.mrf.mxu1  ;;  %v866_v15 = vpack.c.bf16 %v850_v27, %v850_v27  ;;  %v3121_v33 = vld [vmem:[#allocation4 + $0x178] sm:$0xf] }
 0x268   : > { %v2176_v24 = vpop.f32.mrf.mxu3  ;;  %v2082_v62 = vadd.f32 %v4596_v7, %v2081_v39  ;;  %v3123_v39 = vld [vmem:[#allocation4 + $0x19c] sm:$0xf0] }
 0x269   : > { %v4626_v40 = vadd.f32 %v2176_v24, %v2128_v10  ;;  %v4628_v41 = vpop.f32.mrf.mxu0  ;;  %v3115_v10 = vld [vmem:[#allocation4 + $0x194] sm:$0xf0]  ;;  %v3628_v24 = vld [vmem:[#allocation4 + $0x198] sm:$0xf0]  ;;  %882 = vst [vmem:[#allocation4 + $0x20c] sm:$0xf] %v866_v15 }
 0x26a   : > { %2227 = vmatmul.bf16.gmra.mxu1 %v3046_v37  ;;  %1025 = vst [vmem:[#allocation4 + $0x1d0] sm:$0xf] %v866_v15  ;;  %v3728_v15 = vld [vmem:[%s4874_s3 + $0x38] sm:$0xff] }
 0x26b   : > { %2276 = vmatmul.bf16.gmra.mxu2 %v3050_v38  ;;  %v3624_v38 = vld [vmem:[#allocation4 + $0x17c] sm:$0xf]  ;;  %2590 = vmatpush.bf16.msra.mxu0 %v3728_v15 }
 0x26c   : > { %v3126_v45 = vor.u32 %v3624_v38, %v3123_v39  ;;  %3833 = vmatpush.bf16.msra.mxu3 %v3728_v15 }
 0x26d   : > { %2325 = vmatmul.bf16.gmra.mxu3 %v3054_v34 }
 0x26e   : > { %v2130_v36 = vpop.f32.mrf.mxu2 }
 0x26f   : > { %v2131_v19 = vadd.f32 %v2130_v36, %v2082_v62  ;;  %v2083_v48 = vpop.f32.mrf.mxu1 }
 0x270   : > { %v2179_v14 = vpop.f32.mrf.mxu3  ;;  %v2084_v49 = vadd.f32 %v4596_v7, %v2083_v48 }
 0x271   : > { %v4631_v44 = vadd.f32 %v2179_v14, %v2131_v19  ;;  %v4633_v51 = vpop.f32.mrf.mxu0  ;;  %v3118_v19 = vor.u32 %v3623_v32, %v3115_v10  ;;  %v3122_v14 = vor.u32 %v3628_v24, %v3121_v33  ;;  %v3162_v32 = vor.u32 %v3633_v13, %v3159_v16  ;;  %v3727_v24 = vld [vmem:[%s4874_s3 + $0x30] sm:$0xff] }
 0x272   : > { %2591 = vmatpush.bf16.msra.mxu0 %v3727_v24  ;;  %3834 = vmatpush.bf16.msra.mxu3 %v3727_v24 }
 0x276   : > { %v2132_v60 = vpop.f32.mrf.mxu2 }
 0x277   : > { %v2133_v35 = vadd.f32 %v2132_v60, %v2084_v49  ;;  %v2086_v1 = vpop.f32.mrf.mxu1  ;;  %v983_v49 = vld [vmem:[#allocation3 + $0x4a] sm:$0xff]  ;;  %v952_v60 = vpack.c.bf16 %v936_v57, %v936_v57 }
 0x278   : > { %v2181_v61 = vpop.f32.mrf.mxu3  ;;  %v2087_v8 = vadd.f32 %v4596_v7, %v2086_v1 }
 0x279   : > { %v4636_v47 = vadd.f32 %v2181_v61, %v2133_v35  ;;  %v4638_v50 = vpop.f32.mrf.mxu0  ;;  %v984_v35 = vld [vmem:[#allocation3 + $0x52] sm:$0xff]  ;;  %v999_v61 = vpack.c.bf16 %v983_v49, %v983_v49  ;;  %968 = vst [vmem:[#allocation4 + $0x88] sm:$0xf] %v952_v60 }
 0x27a   : > { %2232 = vmatmul.bf16.gmra.mxu1 %v3082_v63  ;;  %v1000_v1 = vpack.c.bf16 %v984_v35, %v984_v35  ;;  %v3725_v60 = vld [vmem:[%s4874_s3 + $0x20] sm:$0xff]  ;;  %v3193_v35 = vld [vmem:[#allocation4 + $0x208] sm:$0xf] }
 0x27b   : > { %2281 = vmatmul.bf16.gmra.mxu2 %v3086_v0  ;;  %1015 = vst [vmem:[#allocation4 + $0x68] sm:$0xf] %v999_v61  ;;  %v3646_v61 = vld [vmem:[#allocation4 + $0x228] sm:$0xf0] }
 0x27c   : > { %1016 = vst [vmem:[#allocation4 + $0x8c] sm:$0xf] %v1000_v1  ;;  %v3194_v16 = vor.u32 %v3646_v61, %v3193_v35 }
 0x27d   : > { %2330 = vmatmul.bf16.gmra.mxu3 %v3090_v2  ;;  %v3632_v2 = vld [vmem:[#allocation4 + $0x1bc] sm:$0xf] }
 0x27e   : > { %v2135_v9 = vpop.f32.mrf.mxu2 }
 0x27f   : > { %v2136_v11 = vadd.f32 %v2135_v9, %v2087_v8  ;;  %v2088_v17 = vpop.f32.mrf.mxu1  ;;  %v3157_v8 = vld [vmem:[#allocation4 + $0x1c0] sm:$0xf] }
 0x280   : > { %v2184_v12 = vpop.f32.mrf.mxu3  ;;  %v2089_v37 = vadd.f32 %v4596_v7, %v2088_v17  ;;  %v3151_v9 = vld [vmem:[#allocation4 + $0x1dc] sm:$0xf0] }
 0x281   : > { %v4641_v25 = vadd.f32 %v2184_v12, %v2136_v11  ;;  %v4643_v26 = vpop.f32.mrf.mxu0  ;;  %v3637_v11 = vld [vmem:[#allocation4 + $0x1e0] sm:$0xf0]  ;;  %v3154_v27 = vor.u32 %v3632_v2, %v3151_v9  ;;  %v3642_v2 = vld [vmem:[#allocation4 + $0x20c] sm:$0xf] }
 0x282   : > { %v3158_v4 = vor.u32 %v3637_v11, %v3157_v8  ;;  %v3195_v8 = vld [vmem:[#allocation4 + $0x22c] sm:$0xf0]  ;;  %v2993_v35 = vld [vmem:[#allocation4 + $0x68] sm:$0xf] }
 0x283   : > { %v3594_v61 = vld [vmem:[#allocation4 + $0x88] sm:$0xf0] }
 0x286   : > { %v2137_v34 = vpop.f32.mrf.mxu2 }
 0x287   : > { %v4646_v62 = vadd.f32 %v2137_v34, %v2089_v37  ;;  %v2091_v43 = vpop.f32.mrf.mxu1  ;;  %v3726_v34 = vld [vmem:[%s4874_s3 + $0x28] sm:$0xff] }
 0x288   : > { %v4648_v36 = vpop.f32.mrf.mxu3  ;;  %v2092_v42 = vadd.f32 %v4596_v7, %v2091_v43  ;;  %2592 = vmatpush.bf16.msra.mxu0 %v3726_v34  ;;  %3835 = vmatpush.bf16.msra.mxu3 %v3726_v34  ;;  %v940_v34 = vld [vmem:[#allocation3 + $0x81] sm:$0xff] }
 0x289   : > { %v4650_v48 = vpop.f32.mrf.mxu0 }
 0x28a   : > { %2237 = vmatmul.bf16.gmra.mxu1 %v3118_v19  ;;  %v937_v19 = vld [vmem:[#allocation3 + $0x61] sm:$0xff] }
 0x28b   : > { %2286 = vmatmul.bf16.gmra.mxu2 %v3122_v14  ;;  %v938_v14 = vld [vmem:[#allocation3 + $0x69] sm:$0xff] }
 0x28c   : > { %2593 = vmatpush.bf16.msra.mxu0 %v3725_v60  ;;  %3836 = vmatpush.bf16.msra.mxu3 %v3725_v60  ;;  %v3721_v60 = vld [vmem:[%s4874_s3] sm:$0xff] }
 0x28d   : > { %2335 = vmatmul.bf16.gmra.mxu3 %v3126_v45  ;;  %v953_v45 = vpack.c.bf16 %v937_v19, %v937_v19 }
 0x28e   : > { %v2140_v46 = vpop.f32.mrf.mxu2 }
 0x28f   : > { %v2141_v53 = vadd.f32 %v2140_v46, %v2092_v42  ;;  %v2093_v58 = vpop.f32.mrf.mxu1  ;;  %v954_v42 = vpack.c.bf16 %v938_v14, %v938_v14  ;;  %v985_v46 = vld [vmem:[#allocation3 + $0x62] sm:$0xff]  ;;  %969 = vst [vmem:[#allocation4 + $0xac] sm:$0xf] %v953_v45  ;;  %v987_v45 = vld [vmem:[#allocation3 + $0x7a] sm:$0xff] }
 0x290   : > { %v2189_v54 = vpop.f32.mrf.mxu3  ;;  %v2094_v12 = vadd.f32 %v4596_v7, %v2093_v58  ;;  %v1001_v57 = vpack.c.bf16 %v985_v46, %v985_v46  ;;  %v3641_v58 = vld [vmem:[#allocation4 + $0x204] sm:$0xf] }
 0x291   : > { %v4653_v63 = vadd.f32 %v2189_v54, %v2141_v53  ;;  %v4655_v0 = vpop.f32.mrf.mxu0  ;;  %v986_v53 = vld [vmem:[#allocation3 + $0x6a] sm:$0xff]  ;;  %970 = vst [vmem:[#allocation4 + $0xd0] sm:$0xf] %v954_v42  ;;  %v3190_v13 = vor.u32 %v3641_v58, %v3187_v52  ;;  %v988_v42 = vld [vmem:[#allocation3 + $0x82] sm:$0xff]  ;;  %v3589_v58 = vld [vmem:[#allocation4 + $0x64] sm:$0xf] }
 0x292   : > { %v1002_v49 = vpack.c.bf16 %v986_v53, %v986_v53  ;;  %1017 = vst [vmem:[#allocation4 + $0xb0] sm:$0xf] %v1001_v57  ;;  %v1003_v57 = vpack.c.bf16 %v987_v45, %v987_v45  ;;  %v2987_v52 = vld [vmem:[#allocation4 + $0x84] sm:$0xf0] }
 0x294   : > { %1018 = vst [vmem:[#allocation4 + $0xd4] sm:$0xf] %v1002_v49  ;;  %v1004_v49 = vpack.c.bf16 %v988_v42, %v988_v42 }
 0x295   : > { %1019 = vst [vmem:[#allocation4 + $0xf8] sm:$0xf] %v1003_v57 }
 0x296   : > { %v2142_v17 = vpop.f32.mrf.mxu2  ;;  %1020 = vst [vmem:[#allocation4 + $0x11c] sm:$0xf] %v1004_v49  ;;  %v3598_v42 = vld [vmem:[#allocation4 + $0xac] sm:$0xf] }
 0x297   : > { %v4658_v21 = vadd.f32 %v2142_v17, %v2094_v12  ;;  %v2096_v31 = vpop.f32.mrf.mxu1  ;;  %v3724_v17 = vld [vmem:[%s4874_s3 + $0x18] sm:$0xff] }
 0x298   : > { %v4660_v22 = vpop.f32.mrf.mxu3  ;;  %v2097_v10 = vadd.f32 %v4596_v7, %v2096_v31  ;;  %2594 = vmatpush.bf16.msra.mxu0 %v3724_v17  ;;  %3837 = vmatpush.bf16.msra.mxu3 %v3724_v17  ;;  %v3023_v57 = vld [vmem:[#allocation4 + $0xcc] sm:$0xf0] }
 0x299   : > { %v4665_v33 = vpop.f32.mrf.mxu0  ;;  %v3029_v49 = vld [vmem:[#allocation4 + $0xb0] sm:$0xf] }
 0x29a   : > { %2242 = vmatmul.bf16.gmra.mxu1 %v3154_v27 }
 0x29b   : > { %2291 = vmatmul.bf16.gmra.mxu2 %v3158_v4  ;;  %v3198_v4 = vor.u32 %v3642_v2, %v3195_v8 }
 0x29d   : > { %2340 = vmatmul.bf16.gmra.mxu3 %v3162_v32  ;;  %v3723_v32 = vld [vmem:[%s4874_s3 + $0x10] sm:$0xff] }
 0x29e   : > { %v2145_v37 = vpop.f32.mrf.mxu2  ;;  %2595 = vmatpush.bf16.msra.mxu0 %v3723_v32  ;;  %3838 = vmatpush.bf16.msra.mxu3 %v3723_v32 }
 0x29f   : > { %v2146_v38 = vadd.f32 %v2145_v37, %v2097_v10  ;;  %v2098_v43 = vpop.f32.mrf.mxu1 }
 0x2a0   : > { %v2194_v39 = vpop.f32.mrf.mxu3  ;;  %v2099_v1 = vadd.f32 %v4596_v7, %v2098_v43  ;;  %v956_v43 = vpack.c.bf16 %v940_v34, %v940_v34  ;;  %v990_v34 = vld [vmem:[#allocation3 + $0x9a] sm:$0xff] }
 0x2a1   : > { %v4674_v54 = vadd.f32 %v2194_v39, %v2146_v38  ;;  %v4676_v29 = vpop.f32.mrf.mxu0  ;;  %v3722_v38 = vld [vmem:[%s4874_s3 + $0x8] sm:$0xff]  ;;  %v1006_v45 = vpack.c.bf16 %v990_v34, %v990_v34 }
 0x2a2   : > { %v939_v39 = vld [vmem:[#allocation3 + $0x79] sm:$0xff]  ;;  %2596 = vmatpush.bf16.msra.mxu0 %v3722_v38  ;;  %3839 = vmatpush.bf16.msra.mxu3 %v3722_v38  ;;  %972 = vst [vmem:[#allocation4 + $0x118] sm:$0xf] %v956_v43 }
 0x2a3   : > { %v955_v14 = vpack.c.bf16 %v939_v39, %v939_v39  ;;  %1022 = vst [vmem:[#allocation4 + $0x164] sm:$0xf] %v1006_v45  ;;  %v992_v45 = vld [vmem:[#allocation3 + $0xb2] sm:$0xff] }
 0x2a5   : > { %971 = vst [vmem:[#allocation4 + $0xf4] sm:$0xf] %v955_v14 }
 0x2a6   : > { %v2147_v9 = vpop.f32.mrf.mxu2  ;;  %2597 = vmatpush.bf16.msra.mxu0 %v3721_v60  ;;  %3840 = vmatpush.bf16.msra.mxu3 %v3721_v60 }
 0x2a7   : > { %v4682_v11 = vadd.f32 %v2147_v9, %v2099_v1  ;;  %v2101_v27 = vpop.f32.mrf.mxu1 }
 0x2a8   : > { %v4684_v12 = vpop.f32.mrf.mxu3  ;;  %v2102_v31 = vadd.f32 %v4596_v7, %v2101_v27 }
 0x2a9   : > { %v4689_v15 = vpop.f32.mrf.mxu0 }
 0x2aa   : > { %2247 = vmatmul.bf16.gmra.mxu1 %v3190_v13  ;;  %v2990_v13 = vor.u32 %v3589_v58, %v2987_v52  ;;  %v3603_v58 = vld [vmem:[#allocation4 + $0xd0] sm:$0xf0] }
 0x2ab   : > { %2296 = vmatmul.bf16.gmra.mxu2 %v3194_v16  ;;  %v2994_v16 = vor.u32 %v3594_v61, %v2993_v35 }
 0x2ad   : > { %2345 = vmatmul.bf16.gmra.mxu3 %v3198_v4 }
 0x2ae   : > { %v2150_v10 = vpop.f32.mrf.mxu2 }
 0x2af   : > { %v2151_v24 = vadd.f32 %v2150_v10, %v2102_v31  ;;  %v2103_v19 = vpop.f32.mrf.mxu1  ;;  %v941_v10 = vld [vmem:[#allocation3 + $0x91] sm:$0xff] }
 0x2b0   : > { %v2199_v37 = vpop.f32.mrf.mxu3  ;;  %v2104_v1 = vadd.f32 %v4596_v7, %v2103_v19  ;;  %v942_v7 = vld [vmem:[#allocation3 + $0x99] sm:$0xff]  ;;  %v957_v38 = vpack.c.bf16 %v941_v10, %v941_v10 }
 0x2b1   : > { %v4698_v46 = vadd.f32 %v2199_v37, %v2151_v24  ;;  %v4700_v53 = vpop.f32.mrf.mxu0  ;;  %v989_v24 = vld [vmem:[#allocation3 + $0x92] sm:$0xff]  ;;  %v958_v39 = vpack.c.bf16 %v942_v7, %v942_v7 }
 0x2b2   : > { %v1005_v19 = vpack.c.bf16 %v989_v24, %v989_v24  ;;  %973 = vst [vmem:[#allocation4 + $0x13c] sm:$0xf] %v957_v38  ;;  %v944_v38 = vld [vmem:[#allocation3 + $0xb1] sm:$0xff] }
 0x2b3   : > { %974 = vst [vmem:[#allocation4 + $0x160] sm:$0xf] %v958_v39  ;;  %v991_v39 = vld [vmem:[#allocation3 + $0xaa] sm:$0xff] }
 0x2b4   : > { %1021 = vst [vmem:[#allocation4 + $0x140] sm:$0xf] %v1005_v19 }
 0x2b6   : > { %v2152_v2 = vpop.f32.mrf.mxu2 }
 0x2b7   : > { %v4706_v8 = vadd.f32 %v2152_v2, %v2104_v1  ;;  %v2213_v17 = vpop.f32.mrf.mxu1  ;;  %v3026_v1 = vor.u32 %v3598_v42, %v3023_v57  ;;  %v3030_v2 = vor.u32 %v3603_v58, %v3029_v49  ;;  %v1008_v49 = vpack.c.bf16 %v992_v45, %v992_v45 }
 0x2b8   : > { %v4708_v9 = vpop.f32.mrf.mxu3  ;;  %v2214_v31 = vadd.f32 %v2213_v17, %v4601_v28 }
 0x2b9   : > { %v2409_v27 = vpop.f32.mrf.mxu0  ;;  %1024 = vst [vmem:[#allocation4 + $0x1ac] sm:$0xf] %v1008_v49 }
 0x2ba   : > { %2413 = vmatmul.bf16.vlgmr.msra.gmra.mxu1 %v2990_v13 }
 0x2bb   : > { %2462 = vmatmul.bf16.vlgmr.msra.gmra.mxu2 %v2994_v16 }
 0x2be   : > { %v2262_v4 = vpop.f32.mrf.mxu2 }
 0x2bf   : > { %v2215_v37 = vpop.f32.mrf.mxu1  ;;  %v2263_v14 = vadd.f32 %v2262_v4, %v2214_v31 }
 0x2c0   : > { %v2311_v32 = vpop.f32.mrf.mxu3  ;;  %v2216_v28 = vadd.f32 %v2215_v37, %v4606_v18  ;;  %v943_v37 = vld [vmem:[#allocation3 + $0xa9] sm:$0xff] }
 0x2c1   : > { %v2411_v43 = vpop.f32.mrf.mxu0  ;;  %v2312_v52 = vadd.f32 %v2311_v32, %v2263_v14  ;;  %v959_v14 = vpack.c.bf16 %v943_v37, %v943_v37  ;;  %v3621_v37 = vld [vmem:[#allocation4 + $0x160] sm:$0xf0] }
 0x2c3   : > { %v2361_v16 = vadd.f32 %v4598_v59, %v2312_v52  ;;  %v960_v59 = vpack.c.bf16 %v944_v38, %v944_v38  ;;  %975 = vst [vmem:[#allocation4 + $0x184] sm:$0xf] %v959_v14 }
 0x2c5   : > { %v2410_v7 = vadd.f32 %v2409_v27, %v2361_v16  ;;  %v3059_v27 = vld [vmem:[#allocation4 + $0x114] sm:$0xf0]  ;;  %976 = vst [vmem:[#allocation4 + $0x1a8] sm:$0xf] %v960_v59 }
 0x2c6   : > { %v2264_v60 = vpop.f32.mrf.mxu2 }
 0x2c7   : > { %v2265_v35 = vadd.f32 %v2264_v60, %v2216_v28  ;;  %v2218_v13 = vpop.f32.mrf.mxu1  ;;  %v3065_v28 = vld [vmem:[#allocation4 + $0xf8] sm:$0xf] }
 0x2c8   : > { %v2313_v61 = vpop.f32.mrf.mxu3  ;;  %v2219_v17 = vadd.f32 %v2218_v13, %v4611_v55  ;;  %v1007_v55 = vpack.c.bf16 %v991_v39, %v991_v39 }
 0x2c9   : > { %v2314_v4 = vadd.f32 %v2313_v61, %v2265_v35  ;;  %v2458_v31 = vpop.f32.mrf.mxu0  ;;  %v3612_v35 = vld [vmem:[#allocation4 + $0x118] sm:$0xf0] }
 0x2ca   : > { %2418 = vmatmul.bf16.gmra.mxu1 %v3026_v1  ;;  %v2459_v32 = vadd.f32 %v2458_v31, %v2410_v7  ;;  %1023 = vst [vmem:[#allocation4 + $0x188] sm:$0xf] %v1007_v55  ;;  %v3066_v13 = vor.u32 %v3612_v35, %v3065_v28  ;;  %v3616_v7 = vld [vmem:[#allocation4 + $0x13c] sm:$0xf]  ;;  %v947_v55 = vld [vmem:[#allocation3 + $0xd9] sm:$0xff] }
 0x2cb   : > { %2467 = vmatmul.bf16.gmra.mxu2 %v3030_v2  ;;  %v2363_v10 = vadd.f32 %v4603_v30, %v2314_v4  ;;  %v3607_v30 = vld [vmem:[#allocation4 + $0xf4] sm:$0xf]  ;;  %v963_v49 = vpack.c.bf16 %v947_v55, %v947_v55 }
 0x2cc   : > { %v2498_v52 = vmax.f32 %v2459_v32, 0.0  ;;  %v3062_v2 = vor.u32 %v3607_v30, %v3059_v27  ;;  %v3101_v32 = vld [vmem:[#allocation4 + $0x140] sm:$0xf]  ;;  %v996_v30 = vld [vmem:[#allocation3 + $0xe2] sm:$0xff]  ;;  %v3131_v35 = vld [vmem:[#allocation4 + $0x1a4] sm:$0xf0] }
 0x2cd   : > { %v2412_v19 = vadd.f32 %v2411_v43, %v2363_v10  ;;  %979 = vst [vmem:[#allocation4 + $0x214] sm:$0xf] %v963_v49 }
 0x2ce   : > { %v2267_v18 = vpop.f32.mrf.mxu2 }
 0x2cf   : > { %v4715_v24 = vadd.f32 %v2267_v18, %v2219_v17  ;;  %v2220_v34 = vpop.f32.mrf.mxu1  ;;  %v3095_v18 = vld [vmem:[#allocation4 + $0x15c] sm:$0xf0] }
 0x2d0   : > { %v2221_v42 = vadd.f32 %v2220_v34, %v4616_v5  ;;  %v3098_v34 = vor.u32 %v3616_v7, %v3095_v18 }
 0x2d1   : > { %v2460_v57 = vpop.f32.mrf.mxu0 }
 0x2d2   : > { %v2461_v58 = vadd.f32 %v2460_v57, %v2412_v19  ;;  %v3102_v19 = vor.u32 %v3621_v37, %v3101_v32  ;;  %v3634_v32 = vld [vmem:[#allocation4 + $0x1cc] sm:$0xf]  ;;  %v3167_v37 = vld [vmem:[#allocation4 + $0x1ec] sm:$0xf0] }
 0x2d4   : > { %v2499_v60 = vmax.f32 %v2461_v58, 0.0  ;;  %v3643_v49 = vld [vmem:[#allocation4 + $0x214] sm:$0xf] }
 0x2d6   : > { %v2514_v43 = vpack.c.bf16 %v2499_v60, %v2498_v52  ;;  %v2269_v61 = vpop.f32.mrf.mxu2  ;;  %v1012_v52 = vpack.c.bf16 %v996_v30, %v996_v30  ;;  %v3625_v60 = vld [vmem:[#allocation4 + $0x184] sm:$0xf] }
 0x2d7   : > { %v4718_v1 = vadd.f32 %v2269_v61, %v2221_v42  ;;  %v2223_v5 = vpop.f32.mrf.mxu1  ;;  %v948_v42 = vld [vmem:[#allocation3 + $0xe1] sm:$0xff] }
 0x2d8   : > { %2598 = vmatmul.bf16.vlgmr.msra.gmra.mxu0 %v2514_v43  ;;  %v2224_v16 = vadd.f32 %v2223_v5, %v4621_v23  ;;  %v964_v58 = vpack.c.bf16 %v948_v42, %v948_v42  ;;  %v3630_v43 = vld [vmem:[#allocation4 + $0x1a8] sm:$0xf0]  ;;  %1028 = vst [vmem:[#allocation4 + $0x23c] sm:$0xf] %v1012_v52 }
 0x2da   : > { %2423 = vmatmul.bf16.gmra.mxu1 %v3062_v2  ;;  %980 = vst [vmem:[#allocation4 + $0x238] sm:$0xf] %v964_v58 }
 0x2db   : > { %2472 = vmatmul.bf16.gmra.mxu2 %v3066_v13  ;;  %v3134_v13 = vor.u32 %v3625_v60, %v3131_v35 }
 0x2de   : > { %v2272_v17 = vpop.f32.mrf.mxu2 }
 0x2df   : > { %v4721_v4 = vadd.f32 %v2272_v17, %v2224_v16  ;;  %v2225_v31 = vpop.f32.mrf.mxu1 }
 0x2e0   : > { %v2226_v10 = vadd.f32 %v2225_v31, %v4626_v40  ;;  %v995_v40 = vld [vmem:[#allocation3 + $0xda] sm:$0xff]  ;;  %v2187_v31 = vadd.f32 %v4648_v36, %v4646_v62  ;;  %v2192_v62 = vadd.f32 %v4660_v22, %v4658_v21  ;;  %v2197_v22 = vadd.f32 %v4684_v12, %v4682_v11 }
 0x2e1   : > { %v1011_v27 = vpack.c.bf16 %v995_v40, %v995_v40  ;;  %v3203_v58 = vld [vmem:[#allocation4 + $0x234] sm:$0xf0] }
 0x2e2   : > { %v3206_v60 = vor.u32 %v3643_v49, %v3203_v58 }
 0x2e3   : > { %1027 = vst [vmem:[#allocation4 + $0x218] sm:$0xf] %v1011_v27  ;;  %v3648_v27 = vld [vmem:[#allocation4 + $0x238] sm:$0xf0] }
 0x2e6   : > { %v2274_v38 = vpop.f32.mrf.mxu2 }
 0x2e7   : > { %v4724_v39 = vadd.f32 %v2274_v38, %v2226_v10  ;;  %v2228_v14 = vpop.f32.mrf.mxu1  ;;  %v3173_v38 = vld [vmem:[#allocation4 + $0x1d0] sm:$0xf] }
 0x2e8   : > { %v2229_v23 = vadd.f32 %v2228_v14, %v4631_v44  ;;  %v3137_v44 = vld [vmem:[#allocation4 + $0x188] sm:$0xf] }
 0x2e9   : > { %v3138_v5 = vor.u32 %v3630_v43, %v3137_v44  ;;  %v2316_v43 = vpop.f32.mrf.mxu3 }
 0x2ea   : > { %2428 = vmatmul.bf16.gmra.mxu1 %v3098_v34  ;;  %v3639_v34 = vld [vmem:[#allocation4 + $0x1f0] sm:$0xf0]  ;;  %v3209_v30 = vld [vmem:[#allocation4 + $0x218] sm:$0xf] }
 0x2eb   : > { %2477 = vmatmul.bf16.gmra.mxu2 %v3102_v19  ;;  %v3210_v35 = vor.u32 %v3648_v27, %v3209_v30 }
 0x2ee   : > { %v2277_v59 = vpop.f32.mrf.mxu2 }
 0x2ef   : > { %v4727_v45 = vadd.f32 %v2277_v59, %v2229_v23  ;;  %v2230_v57 = vpop.f32.mrf.mxu1  ;;  %v3170_v23 = vor.u32 %v3634_v32, %v3167_v37  ;;  %v3174_v59 = vor.u32 %v3639_v34, %v3173_v38  ;;  %v2202_v32 = vadd.f32 %v4708_v9, %v4706_v8 }
 0x2f0   : > { %v2231_v28 = vadd.f32 %v2230_v57, %v4636_v47 }
 0x2f6   : > { %v2279_v61 = vpop.f32.mrf.mxu2 }
 0x2f7   : > { %v4730_v2 = vadd.f32 %v2279_v61, %v2231_v28  ;;  %v2233_v16 = vpop.f32.mrf.mxu1 }
 0x2f8   : > { %v2234_v17 = vadd.f32 %v2233_v16, %v4641_v25  ;;  %v2318_v16 = vpop.f32.mrf.mxu3 }
 0x2fa   : > { %2433 = vmatmul.bf16.gmra.mxu1 %v3134_v13 }
 0x2fb   : > { %2482 = vmatmul.bf16.gmra.mxu2 %v3138_v5 }
 0x2fe   : > { %v2282_v47 = vpop.f32.mrf.mxu2 }
 0x2ff   : > { %v4735_v10 = vadd.f32 %v2282_v47, %v2234_v17  ;;  %v2235_v7 = vpop.f32.mrf.mxu1 }
 0x300   : > { %v2236_v18 = vadd.f32 %v2235_v7, %v2187_v31 }
 0x306   : > { %v2284_v19 = vpop.f32.mrf.mxu2 }
 0x307   : > { %v4737_v14 = vadd.f32 %v2284_v19, %v2236_v18  ;;  %v2238_v25 = vpop.f32.mrf.mxu1  ;;  %v2321_v18 = vpop.f32.mrf.mxu3 }
 0x308   : > { %v2239_v55 = vadd.f32 %v2238_v25, %v4653_v63 }
 0x30a   : > { %2438 = vmatmul.bf16.gmra.mxu1 %v3170_v23 }
 0x30b   : > { %2487 = vmatmul.bf16.gmra.mxu2 %v3174_v59  ;;  %v2317_v59 = vadd.f32 %v2316_v43, %v4715_v24 }
 0x30e   : > { %v2287_v42 = vpop.f32.mrf.mxu2 }
 0x30f   : > { %v4742_v36 = vadd.f32 %v2287_v42, %v2239_v55  ;;  %v2240_v40 = vpop.f32.mrf.mxu1  ;;  %v2323_v19 = vpop.f32.mrf.mxu3  ;;  %v2319_v55 = vadd.f32 %v2318_v16, %v4718_v1  ;;  %v2366_v42 = vadd.f32 %v4608_v20, %v2317_v59  ;;  %v4771_v16 = vld [vmem:[%s4877_s6] ss:$0 sm:$0xff] }
 0x310   : > { %v2241_v57 = vadd.f32 %v2240_v40, %v2192_v62  ;;  %v2324_v20 = vadd.f32 %v2323_v19, %v4724_v39 }
 0x311   : > { %v2368_v8 = vadd.f32 %v4613_v56, %v2319_v55 }
 0x312   : > { %v2373_v43 = vadd.f32 %v4623_v3, %v2324_v20 }
 0x316   : > { %v2289_v28 = vpop.f32.mrf.mxu2 }
 0x317   : > { %v4744_v52 = vadd.f32 %v2289_v28, %v2241_v57  ;;  %v2243_v63 = vpop.f32.mrf.mxu1  ;;  %v2326_v62 = vpop.f32.mrf.mxu3 }
 0x318   : > { %v2244_v44 = vadd.f32 %v2243_v63, %v4674_v54 }
 0x31a   : > { %2443 = vmatmul.bf16.gmra.mxu1 %v3206_v60 }
 0x31b   : > { %2492 = vmatmul.bf16.gmra.mxu2 %v3210_v35  ;;  %v2322_v35 = vadd.f32 %v2321_v18, %v4721_v4 }
 0x31e   : > { %v2292_v21 = vpop.f32.mrf.mxu2 }
 0x31f   : > { %v4749_v61 = vadd.f32 %v2292_v21, %v2244_v44  ;;  %v2245_v13 = vpop.f32.mrf.mxu1  ;;  %v2328_v24 = vpop.f32.mrf.mxu3  ;;  %v2371_v44 = vadd.f32 %v4618_v6, %v2322_v35 }
 0x320   : > { %v2246_v5 = vadd.f32 %v2245_v13, %v2197_v22  ;;  %v2329_v59 = vadd.f32 %v2328_v24, %v4730_v2 }
 0x326   : > { %v2294_v17 = vpop.f32.mrf.mxu2 }
 0x327   : > { %v4751_v47 = vadd.f32 %v2294_v17, %v2246_v5  ;;  %v2248_v31 = vpop.f32.mrf.mxu1  ;;  %v2331_v5 = vpop.f32.mrf.mxu3  ;;  %v3802_v17 = vld [vmem:[%s4189_s13 + $0x8] sm:$0xff]  }
 0x328   : > { %v2249_v7 = vadd.f32 %v2248_v31, %v4698_v46  ;;  %v3733_v3 = vunpack.c.h.bf16 %v3802_v17  ;;  %v2332_v35 = vadd.f32 %v2331_v5, %v4735_v10 }
 0x32e   : > { %v2297_v54 = vpop.f32.mrf.mxu2 }
 0x32f   : > { %v4756_v37 = vadd.f32 %v2297_v54, %v2249_v7  ;;  %v2250_v38 = vpop.f32.mrf.mxu1  ;;  %v3732_v54 = vunpack.c.l.bf16 %v3802_v17 }
 0x330   : > { %v2251_v11 = vadd.f32 %v2250_v38, %v2202_v32  ;;  %v2327_v38 = vadd.f32 %v2326_v62, %v4727_v45 }
 0x336   : > { %v2299_v12 = vpop.f32.mrf.mxu2 }
 0x337   : > { %v4758_v34 = vadd.f32 %v2299_v12, %v2251_v11  ;;  %v2414_v23 = vpop.f32.mrf.mxu1 }
 0x338   : > { %v2415_v40 = vadd.f32 %v2414_v23, %v2366_v42  ;;  %v2376_v42 = vadd.f32 %v4628_v41, %v2327_v38 }
 0x33e   : > { %v2463_v25 = vpop.f32.mrf.mxu2 }
 0x33f   : > { %v2416_v46 = vpop.f32.mrf.mxu1  ;;  %v2464_v9 = vadd.f32 %v2463_v25, %v2415_v40  ;;  %v2333_v25 = vpop.f32.mrf.mxu3 }
 0x340   : > { %v2417_v57 = vadd.f32 %v2416_v46, %v2368_v8 }
 0x341   : > { %v2500_v27 = vmax.f32 %v2464_v9, 0.0 }
 0x346   : > { %v2465_v49 = vpop.f32.mrf.mxu2 }
 0x347   : > { %v2466_v58 = vadd.f32 %v2465_v49, %v2417_v57  ;;  %v2419_v30 = vpop.f32.mrf.mxu1  ;;  %v2378_v57 = vadd.f32 %v4633_v51, %v2329_v59  ;;  %v2336_v2 = vpop.f32.mrf.mxu3  ;;  %v2381_v51 = vadd.f32 %v4638_v50, %v2332_v35 }
 0x348   : > { %v2420_v56 = vadd.f32 %v2419_v30, %v2371_v44  ;;  %v2337_v10 = vadd.f32 %v2336_v2, %v4742_v36 }
 0x349   : > { %v2501_v28 = vmax.f32 %v2466_v58, 0.0 }
 0x34b   : > { %v2515_v60 = vpack.c.bf16 %v2501_v28, %v2500_v27 }
 0x34d   : > { %2603 = vmatmul.bf16.vlgmr.msra.gmra.mxu3 %v2515_v60 }
 0x34e   : > { %v2468_v1 = vpop.f32.mrf.mxu2 }
 0x34f   : > { %v2421_v63 = vpop.f32.mrf.mxu1  ;;  %v2469_v21 = vadd.f32 %v2468_v1, %v2420_v56  ;;  %v2334_v1 = vadd.f32 %v2333_v25, %v4737_v14  ;;  %v2338_v56 = vpop.f32.mrf.mxu3 }
 0x350   : > { %v2422_v22 = vadd.f32 %v2421_v63, %v2373_v43 }
 0x351   : > { %v2502_v39 = vmax.f32 %v2469_v21, 0.0  ;;  %v2383_v44 = vadd.f32 %v4643_v26, %v2334_v1 }
 0x355   : > { %v2599_v13 = vpop.f32.mrf.mxu0 }
 0x356   : > { %v2470_v4 = vpop.f32.mrf.mxu2  ;;  %v2600_v6 = vadd.f32 %v4771_v16, %v2599_v13 }
 0x357   : > { %v2471_v31 = vadd.f32 %v2470_v4, %v2422_v22  ;;  %v2424_v7 = vpop.f32.mrf.mxu1  ;;  %v2341_v5 = vpop.f32.mrf.mxu3 }
 0x358   : > { %v2675_v12 = vadd.f32 %v3732_v54, %v2600_v6  ;;  %v2425_v9 = vadd.f32 %v2424_v7, %v2376_v42  ;;  %v2342_v59 = vadd.f32 %v2341_v5, %v4749_v61 }
 0x359   : > { %v2503_v18 = vmax.f32 %v2471_v31, 0.0 }
 0x35a   : > { %v2691_v40 = vmax.f32 %v2675_v12, 0.0 }
 0x35b   : > { %v2516_v32 = vpack.c.bf16 %v2503_v18, %v2502_v39  ;;  %v2339_v39 = vadd.f32 %v2338_v56, %v4744_v52  ;;  %v2386_v18 = vadd.f32 %v4650_v48, %v2337_v10  ;;  %v2391_v48 = vadd.f32 %v4665_v33, %v2342_v59 }
 0x35d   : > { %v2601_v11 = vpop.f32.mrf.mxu0  ;;  %2608 = vmatmul.bf16.gmra.mxu3 %v2516_v32  ;;  %v2388_v6 = vadd.f32 %v4655_v0, %v2339_v39 }
 0x35e   : > { %v2602_v19 = vadd.f32 %v4771_v16, %v2601_v11  ;;  %v2473_v23 = vpop.f32.mrf.mxu2 }
 0x35f   : > { %v2426_v46 = vpop.f32.mrf.mxu1  ;;  %v2474_v62 = vadd.f32 %v2473_v23, %v2425_v9  ;;  %v2343_v11 = vpop.f32.mrf.mxu3 }
 0x360   : > { %v2676_v55 = vadd.f32 %v3733_v3, %v2602_v19  ;;  %v2427_v49 = vadd.f32 %v2426_v46, %v2378_v57  ;;  %v2344_v52 = vadd.f32 %v2343_v11, %v4751_v47 }
 0x361   : > { %v2504_v28 = vmax.f32 %v2474_v62, 0.0 }
 0x362   : > { %v2692_v8 = vmax.f32 %v2676_v55, 0.0  ;;  %v2393_v42 = vadd.f32 %v4676_v29, %v2344_v52 }
 0x364   : > { %v3765_v45 = vpack.c.bf16 %v2692_v8, %v2691_v40 }
 0x366   : > { %3766 = vst [vmem:[%s4135_s22] sm:$0xff] %v3765_v45   ;;  %v2475_v58 = vpop.f32.mrf.mxu2 }
 0x367   : > { %v2476_v30 = vadd.f32 %v2475_v58, %v2427_v49  ;;  %v2429_v27 = vpop.f32.mrf.mxu1  ;;  %v2346_v46 = vpop.f32.mrf.mxu3 }
 0x368   : > { %v2430_v63 = vadd.f32 %v2429_v27, %v2381_v51 }
 0x369   : > { %v2505_v60 = vmax.f32 %v2476_v30, 0.0  ;;  %v2347_v30 = vadd.f32 %v2346_v46, %v4756_v37  ;;  %v3806_v46 = vld [vmem:[%s4189_s13 + $0x28] sm:$0xff]  }
 0x36b   : > { %v2517_v24 = vpack.c.bf16 %v2505_v60, %v2504_v28  ;;  %v2396_v27 = vadd.f32 %v4689_v15, %v2347_v30  ;;  %v3807_v30 = vld [vmem:[%s4189_s13 + $0x30] sm:$0xff]  }
 0x36d   : > { %2613 = vmatmul.bf16.gmra.mxu3 %v2517_v24 }
 0x36e   : > { %v2478_v41 = vpop.f32.mrf.mxu2 }
 0x36f   : > { %v2431_v20 = vpop.f32.mrf.mxu1  ;;  %v2479_v43 = vadd.f32 %v2478_v41, %v2430_v63  ;;  %v2348_v61 = vpop.f32.mrf.mxu3  ;;  %v3803_v63 = vld [vmem:[%s4189_s13 + $0x10] sm:$0xff]  }
 0x370   : > { %v2432_v21 = vadd.f32 %v2431_v20, %v2383_v44  ;;  %v2349_v33 = vadd.f32 %v2348_v61, %v4758_v34  ;;  %v3736_v44 = vunpack.c.l.bf16 %v3803_v63  ;;  %v3737_v15 = vunpack.c.h.bf16 %v3803_v63 }
 0x371   : > { %v2506_v17 = vmax.f32 %v2479_v43, 0.0 }
 0x372   : > { %v2398_v60 = vadd.f32 %v4700_v53, %v2349_v33  ;;  %v3752_v33 = vunpack.c.l.bf16 %v3807_v30 }
 0x376   : > { %v2480_v22 = vpop.f32.mrf.mxu2 }
 0x377   : > { %v2481_v13 = vadd.f32 %v2480_v22, %v2432_v21  ;;  %v2434_v4 = vpop.f32.mrf.mxu1 }
 0x378   : > { %v2435_v26 = vadd.f32 %v2434_v4, %v2386_v18 }
 0x379   : > { %v2507_v31 = vmax.f32 %v2481_v13, 0.0 }
 0x37b   : > { %v2518_v7 = vpack.c.bf16 %v2507_v31, %v2506_v17  ;;  %v3804_v31 = vld [vmem:[%s4189_s13 + $0x18] sm:$0xff]  }
 0x37c   : > { %v3740_v10 = vunpack.c.l.bf16 %v3804_v31  ;;  %v3741_v5 = vunpack.c.h.bf16 %v3804_v31 }
 0x37d   : > { %2618 = vmatmul.bf16.gmra.mxu3 %v2518_v7 }
 0x37e   : > { %v2483_v14 = vpop.f32.mrf.mxu2 }
 0x37f   : > { %v2436_v50 = vpop.f32.mrf.mxu1  ;;  %v2484_v54 = vadd.f32 %v2483_v14, %v2435_v26 }
 0x380   : > { %v2437_v32 = vadd.f32 %v2436_v50, %v2388_v6 }
 0x381   : > { %v2508_v19 = vmax.f32 %v2484_v54, 0.0 }
 0x386   : > { %v2485_v3 = vpop.f32.mrf.mxu2 }
 0x387   : > { %v2486_v38 = vadd.f32 %v2485_v3, %v2437_v32  ;;  %v2439_v12 = vpop.f32.mrf.mxu1  ;;  %v3805_v3 = vld [vmem:[%s4189_s13 + $0x20] sm:$0xff]  }
 0x388   : > { %v2440_v0 = vadd.f32 %v2439_v12, %v2391_v48  ;;  %v3744_v11 = vunpack.c.l.bf16 %v3805_v3  ;;  %v3745_v12 = vunpack.c.h.bf16 %v3805_v3 }
 0x389   : > { %v2509_v23 = vmax.f32 %v2486_v38, 0.0 }
 0x38b   : > { %v2519_v36 = vpack.c.bf16 %v2509_v23, %v2508_v19 }
 0x38d   : > { %2623 = vmatmul.bf16.gmra.mxu3 %v2519_v36 }
 0x38e   : > { %v2488_v25 = vpop.f32.mrf.mxu2 }
 0x38f   : > { %v2441_v55 = vpop.f32.mrf.mxu1  ;;  %v2489_v40 = vadd.f32 %v2488_v25, %v2440_v0 }
 0x390   : > { %v2442_v8 = vadd.f32 %v2441_v55, %v2393_v42  ;;  %v3748_v42 = vunpack.c.l.bf16 %v3806_v46 }
 0x391   : > { %v2510_v62 = vmax.f32 %v2489_v40, 0.0  ;;  %v3749_v40 = vunpack.c.h.bf16 %v3806_v46 }
 0x396   : > { %v2490_v9 = vpop.f32.mrf.mxu2 }
 0x397   : > { %v2491_v57 = vadd.f32 %v2490_v9, %v2442_v8  ;;  %v2444_v45 = vpop.f32.mrf.mxu1 }
 0x398   : > { %v2445_v29 = vadd.f32 %v2444_v45, %v2396_v27  ;;  %v3753_v27 = vunpack.c.h.bf16 %v3807_v30 }
 0x399   : > { %v2511_v49 = vmax.f32 %v2491_v57, 0.0 }
 0x39b   : > { %v2520_v58 = vpack.c.bf16 %v2511_v49, %v2510_v62 }
 0x39d   : > { %2628 = vmatmul.bf16.gmra.mxu3 %v2520_v58 }
 0x39e   : > { %v2493_v47 = vpop.f32.mrf.mxu2 }
 0x39f   : > { %v2446_v28 = vpop.f32.mrf.mxu1  ;;  %v2494_v2 = vadd.f32 %v2493_v47, %v2445_v29 }
 0x3a0   : > { %v2447_v24 = vadd.f32 %v2446_v28, %v2398_v60 }
 0x3a1   : > { %v2512_v1 = vmax.f32 %v2494_v2, 0.0 }
 0x3a6   : > { %v2495_v35 = vpop.f32.mrf.mxu2 }
 0x3a7   : > { %v2496_v41 = vadd.f32 %v2495_v35, %v2447_v24 }
 0x3a9   : > { %v2513_v20 = vmax.f32 %v2496_v41, 0.0 }
 0x3ab   : > { %v2521_v51 = vpack.c.bf16 %v2513_v20, %v2512_v1  ;;  %v3808_v20 = vld [vmem:[%s4189_s13 + $0x38] sm:$0xff]  }
 0x3ac   : > { %v3757_v63 = vunpack.c.h.bf16 %v3808_v20 }
 0x3ad   : > { %2633 = vmatmul.bf16.gmra.mxu3 %v2521_v51 }
 0x3d0   : > { %v2604_v37 = vpop.f32.mrf.mxu3 }
 0x3d1   : > { %v2605_v34 = vadd.f32 %v4771_v16, %v2604_v37  ;;  %v3756_v37 = vunpack.c.l.bf16 %v3808_v20 }
 0x3d3   : > { %v2677_v43 = vadd.f32 %v3736_v44, %v2605_v34 }
 0x3d5   : > { %v2693_v22 = vmax.f32 %v2677_v43, 0.0 }
 0x3d8   : > { %v2606_v56 = vpop.f32.mrf.mxu3 }
 0x3d9   : > { %v2607_v53 = vadd.f32 %v4771_v16, %v2606_v56 }
 0x3db   : > { %v2678_v21 = vadd.f32 %v3737_v15, %v2607_v53 }
 0x3dd   : > { %v2694_v13 = vmax.f32 %v2678_v21, 0.0 }
 0x3df   : > { %v3770_v4 = vpack.c.bf16 %v2694_v13, %v2693_v22  ;;  %v3809_v13 = vld [vmem:[%s4189_s13 + $0x40] sm:$0xff]   ;;  %s4886_s13 = sand.u32 1, %s3991_s25  }
 0x3e0   : > { %v2609_v17 = vpop.f32.mrf.mxu3  ;;  %v3761_v31 = vunpack.c.h.bf16 %v3809_v13  ;;  %s2740_s17 = scalar_lea.sflag [#allocation7], %s4886_s13 }
 0x3e1   : > { %3810 = vst [vmem:[%s4135_s22 + $0x8] sm:$0xff] %v3770_v4   ;;  %v2610_v7 = vadd.f32 %v4771_v16, %v2609_v17  ;;  %v3760_v17 = vunpack.c.l.bf16 %v3809_v13 }
 0x3e3   : > { %v2679_v39 = vadd.f32 %v3740_v10, %v2610_v7 }
 0x3e5   : > { %v2695_v26 = vmax.f32 %v2679_v39, 0.0 }
 0x3e8   : > { %v2611_v14 = vpop.f32.mrf.mxu3 }
 0x3e9   : > { %v2612_v50 = vadd.f32 %v4771_v16, %v2611_v14 }
 0x3eb   : > { %v2680_v18 = vadd.f32 %v3741_v5, %v2612_v50 }
 0x3ed   : > { %v2696_v6 = vmax.f32 %v2680_v18, 0.0 }
 0x3ef   : > { %v3775_v54 = vpack.c.bf16 %v2696_v6, %v2695_v26 }
 0x3f0   : > { %v2614_v32 = vpop.f32.mrf.mxu3 }
 0x3f1   : > { %3811 = vst [vmem:[%s4135_s22 + $0x10] sm:$0xff] %v3775_v54   ;;  %v2615_v38 = vadd.f32 %v4771_v16, %v2614_v32 }
 0x3f3   : > { %v2681_v23 = vadd.f32 %v3744_v11, %v2615_v38 }
 0x3f5   : > { %v2697_v25 = vmax.f32 %v2681_v23, 0.0 }
 0x3f8   : > { %v2616_v19 = vpop.f32.mrf.mxu3 }
 0x3f9   : > { %v2617_v36 = vadd.f32 %v4771_v16, %v2616_v19 }
 0x3fb   : > { %v2682_v59 = vadd.f32 %v3745_v12, %v2617_v36 }
 0x3fd   : > { %v2698_v52 = vmax.f32 %v2682_v59, 0.0 }
 0x3ff   : > { %v3780_v55 = vpack.c.bf16 %v2698_v52, %v2697_v25 }
 0x400   : > { %v2619_v48 = vpop.f32.mrf.mxu3 }
 0x401   : > { %3812 = vst [vmem:[%s4135_s22 + $0x18] sm:$0xff] %v3780_v55   ;;  %v2620_v0 = vadd.f32 %v4771_v16, %v2619_v48 }
 0x403   : > { %v2683_v9 = vadd.f32 %v3748_v42, %v2620_v0 }
 0x405   : > { %v2699_v62 = vmax.f32 %v2683_v9, 0.0 }
 0x408   : > { %v2621_v8 = vpop.f32.mrf.mxu3 }
 0x409   : > { %v2622_v57 = vadd.f32 %v4771_v16, %v2621_v8 }
 0x40b   : > { %v2684_v45 = vadd.f32 %v3749_v40, %v2622_v57 }
 0x40d   : > { %v2700_v49 = vmax.f32 %v2684_v45, 0.0 }
 0x40f   : > { %v3785_v58 = vpack.c.bf16 %v2700_v49, %v2699_v62 }
 0x410   : > { %v2624_v61 = vpop.f32.mrf.mxu3 }
 0x411   : > { %3813 = vst [vmem:[%s4135_s22 + $0x20] sm:$0xff] %v3785_v58   ;;  %v2625_v47 = vadd.f32 %v4771_v16, %v2624_v61 }
 0x413   : > { %v2685_v29 = vadd.f32 %v3752_v33, %v2625_v47 }
 0x415   : > { %v2701_v24 = vmax.f32 %v2685_v29, 0.0 }
 0x418   : > { %v2626_v28 = vpop.f32.mrf.mxu3 }
 0x419   : > { %v2627_v60 = vadd.f32 %v4771_v16, %v2626_v28 }
 0x41b   : > { %v2686_v2 = vadd.f32 %v3753_v27, %v2627_v60 }
 0x41d   : > { %v2702_v35 = vmax.f32 %v2686_v2, 0.0 }
 0x41f   : > { %v3790_v41 = vpack.c.bf16 %v2702_v35, %v2701_v24 }
 0x420   : > { %v2629_v1 = vpop.f32.mrf.mxu3 }
 0x421   : > { %3814 = vst [vmem:[%s4135_s22 + $0x28] sm:$0xff] %v3790_v41   ;;  %v2630_v51 = vadd.f32 %v4771_v16, %v2629_v1 }
 0x423   : > { %v2687_v44 = vadd.f32 %v3756_v37, %v2630_v51 }
 0x425   : > { %v2703_v43 = vmax.f32 %v2687_v44, 0.0 }
 0x428   : > { %v2631_v34 = vpop.f32.mrf.mxu3 }
 0x429   : > { %v2632_v15 = vadd.f32 %v4771_v16, %v2631_v34 }
 0x42b   : > { %v2688_v56 = vadd.f32 %v3757_v63, %v2632_v15 }
 0x42d   : > { %v2704_v53 = vmax.f32 %v2688_v56, 0.0 }
 0x42f   : > { %v3795_v21 = vpack.c.bf16 %v2704_v53, %v2703_v43 }
 0x430   : > { %v2634_v22 = vpop.f32.mrf.mxu3 }
 0x431   : > { %3815 = vst [vmem:[%s4135_s22 + $0x30] sm:$0xff] %v3795_v21   ;;  %v2635_v4 = vadd.f32 %v4771_v16, %v2634_v22 }
 0x433   : > { %v2689_v10 = vadd.f32 %v3760_v17, %v2635_v4 }
 0x435   : > { %v2705_v39 = vmax.f32 %v2689_v10, 0.0 }
 0x438   : > { %v2636_v7 = vpop.f32.mrf.mxu3 }
 0x439   : > { %v2637_v5 = vadd.f32 %v4771_v16, %v2636_v7 }
 0x43b   : > { %v2690_v14 = vadd.f32 %v3761_v31, %v2637_v5 }
 0x43d   : > { %v2706_v50 = vmax.f32 %v2690_v14, 0.0 }
 0x43f   : > { %v3800_v18 = vpack.c.bf16 %v2706_v50, %v2705_v39 }
 0x441   : > { %3816 = vst [vmem:[%s4135_s22 + $0x38] sm:$0xff] %v3800_v18  }
 0x442   : > { %3946 = shalt.err (!%p3943_p7)
}
 0x443   : > { %s4019_s22 = smov 64   ;;  %s4020_s20 = smov 4  }
 0x444   : > { %3841 = dma.vmem_to_hbm [thread:$0]  (%p4112_p3), %s2755_s27, 1024, %s2757_s28, %s2740_s17, %s4019_s22, %s4019_s22, %s4020_s20  }
 0x445 PF: > { %p3847_p9 = scmp.ge.s32.totalorder %s4015_s8, 2  ;;  %s2771_s16 = sand.u32 1, %s3987_s24  }
 0x446   : > { %s2772_s13 = scalar_lea.sflag [#allocation7], %s2771_s16 }
 0x447   : > { %p3844_p10 = pnand %p3847_p9, %p4121_p8 }
 0x449   : > { %p3845_p11 = pneg %p3844_p10 }
 0x44b   : > { %3982 = dma.done.wait (%p3845_p11), %s2772_s13, 1024  }
 0x44c   : > { %3984 = vsyncadd (%p3845_p11), %s2772_s13, 4294966272  ;;  %s20_s8 = sadd.s32 1, %s4015_s8   ;;  %s4887_s24 = smov %s3991_s25 }
 0x44d   : > { %p17_p12 = scmp.ge.s32.totalorder %s20_s8, 6   ;;  %s4888_s25 = smov %s3995_s26 }
 0x44e   : > { %s4889_s26 = smov %s4130_s19  ;;  %s4890_s27 = smov %s4007_s29 }
 0x44f   : > { %s4891_s28 = smov %s4011_s30  ;;  %s4892_s29 = smov %s4895_s11 }
 0x450   : > { %s4893_s30 = smov %s4899_s12  ;;  %19 = sbr.rel (!%p17_p12) target bundleno = 8 (0x8), region = 117 }
 0x455   :  { %2778 = vsyncpa [#allocation7], 1 }
 0x456   :  { %2780 = vsyncpa [#allocation7 + $0x1], 1 }
 0x457   :  { %2781 = vsyncmov [#allocation5] }
 0x45a   :  { %s2782_s14 = vpop.sfrf %2781 }
 0x45b   :  { %p3555_p3 = scmp.ne.s32.totalorder %s2782_s14, 0 }
 0x45d   :  { %2786 = shalt.err (%p3555_p3)  }

</bundles_post_ra>
